<compile_context>
chip_gen: v5e
topology: v5e:2x2
jax: 0.10.0
libtpu: 0.0.40
codegen_flags: <defaults>
</compile_context>

<pallas_src>
import jax
import jax.numpy as jnp
from jax.experimental import pallas as pl
from jax.experimental.pallas import tpu as pltpu

# ----------------------------- config ---------------------------------------
B = 2            # batch
S = 8            # sequence length
H = 32           # hidden size
NUM_HEADS = 2
HEAD_DIM = H // NUM_HEADS
FFN = 64         # intermediate size
VOCAB = 100
NUM_LAYERS = 2
TFIDF_DIM = 16
CLS_HIDDEN = 32
NUM_CLASSES = 2

BS = B * S
VOCAB_PAD = ((VOCAB + 7) // 8) * 8        # 8-row aligned vocab section
PLANES = 128                              # lane width of the packed param blob
IO_LANES = max(BS, TFIDF_DIM)

# -------- packed parameter blob row map (matrix sections are 8-row aligned) ---
R_WORD = 0                                # (VOCAB_PAD, H)  word embeddings
R_LAYER0 = R_WORD + VOCAB_PAD
RL_WQKV = 0                               # (H, 3H) fused Q|K|V
RL_WO = RL_WQKV + H                       # (H, H)
RL_W1 = RL_WO + H                         # (H, FFN)
RL_W2 = RL_W1 + H                         # (FFN, H)
LROWS = RL_W2 + FFN                       # rows per encoder layer
R_POOLW = R_LAYER0 + NUM_LAYERS * LROWS   # (H, H)
R_CLSW1 = R_POOLW + H                     # (H+TFIDF, CLS_HIDDEN) pre-stacked
R_CLSW2 = R_CLSW1 + (H + TFIDF_DIM)       # (CLS_HIDDEN, NUM_CLASSES)
R_POS = R_CLSW2 + CLS_HIDDEN              # (BS, H) pre-tiled position emb
# one parameter vector per row below (biases / LayerNorm gamma,beta)
V_EMB_G = R_POS + BS
V_EMB_B = V_EMB_G + 1
V_LAYER0 = V_EMB_B + 1
(V_BQKV, V_BO, V_LN1G, V_LN1B, V_B1, V_B2, V_LN2G, V_LN2B) = range(8)
VPER = 8
V_POOL_B = V_LAYER0 + NUM_LAYERS * VPER
V_CLS_B1 = V_POOL_B + 1
V_CLS_B2 = V_CLS_B1 + 1
TOTAL_ROWS = ((V_CLS_B2 + 1 + 7) // 8) * 8

# io blob rows: [0:BS]   additive attention bias (BS, BS)
#               [BS:BS+B] tfidf features (B, TFIDF_DIM)
IO_ROWS = BS + B


# ----------------------------- kernel ----------------------------------------


def _layernorm(x, gamma, beta, eps=1e-12):
    mu = jnp.mean(x, axis=-1, keepdims=True)
    var = jnp.mean((x - mu) ** 2, axis=-1, keepdims=True)
    return (x - mu) * jax.lax.rsqrt(var + eps) * gamma + beta


def _row(p_ref, r, d):
    # single parameter-vector row -> (1, d), broadcast against (rows, d)
    return p_ref[r:r + 1, :d]


def fused_kernel(ids_ref, io_ref, p_ref, o_ref):
    """Whole HateSpeechClassifier forward in one VMEM-resident kernel."""
    dh = HEAD_DIM
    scale = jnp.float32(1.0 / (dh ** 0.5))

    # ---- embedding lookup (one-hot matmul == gather) + positions + LN -------
    ids = ids_ref[...]                                            # (BS, 1) int32
    onehot = (ids == jax.lax.broadcasted_iota(jnp.int32, (BS, VOCAB_PAD), 1)
              ).astype(jnp.float32)                               # (BS, VOCAB_PAD)
    x = jnp.dot(onehot, p_ref[R_WORD:R_WORD + VOCAB_PAD, :H],
                preferred_element_type=jnp.float32)               # (BS, H)
    x = x + p_ref[R_POS:R_POS + BS, :H]                           # pre-tiled pos emb
    x = _layernorm(x, _row(p_ref, V_EMB_G, H), _row(p_ref, V_EMB_B, H))

    # additive attention bias (block-diagonal over batch + key padding),
    # precomputed wrapper-side, shared by every layer and head
    attn_bias = io_ref[0:BS, :BS]                                 # (BS, BS)

    # ---- encoder layers (statically unrolled) --------------------------------
    for l in range(NUM_LAYERS):
        base = R_LAYER0 + l * LROWS
        vb = V_LAYER0 + l * VPER

        # fused QKV projection: single (BS, H) @ (H, 3H) matmul
        qkv = (jnp.dot(x, p_ref[base + RL_WQKV:base + RL_WQKV + H, :3 * H],
                       preferred_element_type=jnp.float32)
               + _row(p_ref, vb + V_BQKV, 3 * H))                 # (BS, 3H)

        # 2-D per-head attention; heads projected straight through Wo slabs
        ctx_proj = None
        for h in range(NUM_HEADS):
            qh = qkv[:, h * dh:(h + 1) * dh]                      # (BS, dh)
            kh = qkv[:, H + h * dh:H + (h + 1) * dh]
            vh = qkv[:, 2 * H + h * dh:2 * H + (h + 1) * dh]

            sc = jax.lax.dot_general(                             # q @ k^T
                qh, kh, (((1,), (1,)), ((), ())),
                preferred_element_type=jnp.float32) * scale + attn_bias
            sc = sc - jnp.max(sc, axis=-1, keepdims=True)
            p = jnp.exp(sc)
            p = p / jnp.sum(p, axis=-1, keepdims=True)            # exact softmax
            ctx = jnp.dot(p, vh, preferred_element_type=jnp.float32)  # (BS, dh)

            wo_h = p_ref[base + RL_WO + h * dh:base + RL_WO + (h + 1) * dh, :H]
            part = jnp.dot(ctx, wo_h, preferred_element_type=jnp.float32)
            ctx_proj = part if ctx_proj is None else ctx_proj + part

        attn = ctx_proj + _row(p_ref, vb + V_BO, H)

        hdn = _layernorm(x + attn,
                         _row(p_ref, vb + V_LN1G, H), _row(p_ref, vb + V_LN1B, H))

        ff = (jnp.dot(hdn, p_ref[base + RL_W1:base + RL_W1 + H, :FFN],
                      preferred_element_type=jnp.float32)
              + _row(p_ref, vb + V_B1, FFN))
        # TODO(synk): HF BERT default GELU is the exact erf form; tanh approx kept here.
        ff = jax.nn.gelu(ff, approximate=True)
        ff = (jnp.dot(ff, p_ref[base + RL_W2:base + RL_W2 + FFN, :H],
                      preferred_element_type=jnp.float32)
              + _row(p_ref, vb + V_B2, H))
        x = _layernorm(hdn + ff,
                       _row(p_ref, vb + V_LN2G, H), _row(p_ref, vb + V_LN2B, H))

    # ---- pooler (CLS token + tanh), concat with tfidf, classifier MLP -------
    cls = x.reshape(B, S, H)[:, 0, :]                             # (B, H)
    pooled = jnp.tanh(
        jnp.dot(cls, p_ref[R_POOLW:R_POOLW + H, :H],
                preferred_element_type=jnp.float32) + _row(p_ref, V_POOL_B, H))

    tfidf = io_ref[BS:BS + B, :TFIDF_DIM]                         # (B, TFIDF)
    feats = jnp.concatenate([pooled, tfidf], axis=-1)             # (B, H+TFIDF)

    hid = (jnp.dot(feats, p_ref[R_CLSW1:R_CLSW1 + H + TFIDF_DIM, :CLS_HIDDEN],
                   preferred_element_type=jnp.float32)
           + _row(p_ref, V_CLS_B1, CLS_HIDDEN))
    hid = jnp.maximum(hid, 0.0)
    o_ref[...] = (jnp.dot(hid, p_ref[R_CLSW2:R_CLSW2 + CLS_HIDDEN, :NUM_CLASSES],
                          preferred_element_type=jnp.float32)
                  + _row(p_ref, V_CLS_B2, NUM_CLASSES))


# --------------------------- pallas_call wrapper ------------------------------


def hate_speech_classifier_forward(param_blob, bert_tokens_ids,
                                   bert_tokens_attention, tfidf_features):
    ids2 = bert_tokens_ids.reshape(BS, 1).astype(jnp.int32)

    # Precompute the additive attention bias (pure input preprocessing, same as
    # HF's get_extended_attention_mask): -1e9 for padded keys AND cross-batch
    # pairs (batch is folded into the row dim inside the kernel).
    mask_flat = bert_tokens_attention.reshape(1, BS).astype(jnp.float32)
    batch_ids = jnp.repeat(jnp.arange(B, dtype=jnp.int32), S)
    same_batch = batch_ids[:, None] == batch_ids[None, :]                # (BS, BS)
    keep = jnp.logical_and(same_batch, mask_flat > 0.5)
    attn_bias = jnp.where(keep, 0.0, -1e9).astype(jnp.float32)

    io = jnp.zeros((IO_ROWS, IO_LANES), jnp.float32)
    io = io.at[:BS, :BS].set(attn_bias)
    io = io.at[BS:BS + B, :TFIDF_DIM].set(tfidf_features.astype(jnp.float32))

    vmem = pl.BlockSpec(memory_space=pltpu.MemorySpace.VMEM)
    return pl.pallas_call(
        fused_kernel,
        out_shape=jax.ShapeDtypeStruct((B, NUM_CLASSES), jnp.float32),
        in_specs=[vmem, vmem, vmem],   # 3 VMEM-resident operands, no grid,
        out_specs=vmem,                # no double-buffering, single dispatch
    )(ids2, io, param_blob)


# ----------------------------- parameters ------------------------------------


def init_params(key):
    ks = iter(jax.random.split(key, 32))

    def dense(shape):
        return 0.02 * jax.random.normal(next(ks), shape, jnp.float32)

    return {
        'word_emb': dense((VOCAB, H)),
        'pos_emb': dense((S, H)),
        'emb_ln_g': jnp.ones((1, H), jnp.float32),
        'emb_ln_b': jnp.zeros((1, H), jnp.float32),
        # per-layer weights stacked along a leading NUM_LAYERS axis
        'wqkv': dense((NUM_LAYERS, H, 3 * H)),                 # fused Q|K|V
        'bqkv': jnp.zeros((NUM_LAYERS, 1, 3 * H), jnp.float32),
        'wo': dense((NUM_LAYERS, H, H)),
        'bo': jnp.zeros((NUM_LAYERS, 1, H), jnp.float32),
        'ln1_g': jnp.ones((NUM_LAYERS, 1, H), jnp.float32),
        'ln1_b': jnp.zeros((NUM_LAYERS, 1, H), jnp.float32),
        'w1': dense((NUM_LAYERS, H, FFN)),
        'b1': jnp.zeros((NUM_LAYERS, 1, FFN), jnp.float32),
        'w2': dense((NUM_LAYERS, FFN, H)),
        'b2': jnp.zeros((NUM_LAYERS, 1, H), jnp.float32),
        'ln2_g': jnp.ones((NUM_LAYERS, 1, H), jnp.float32),
        'ln2_b': jnp.zeros((NUM_LAYERS, 1, H), jnp.float32),
        # pooler
        'pool_w': dense((H, H)),
        'pool_b': jnp.zeros((1, H), jnp.float32),
        # classification head over concat([cls, tfidf], 1):
        #   Linear(H+TFIDF, CLS_HIDDEN) -> ReLU -> Linear(CLS_HIDDEN, C)
        'cls_w1': dense((H + TFIDF_DIM, CLS_HIDDEN)),          # = torch weight.T
        'cls_b1': jnp.zeros((1, CLS_HIDDEN), jnp.float32),
        'cls_w2': dense((CLS_HIDDEN, NUM_CLASSES)),
        'cls_b2': jnp.zeros((1, NUM_CLASSES), jnp.float32),
    }


def pack_params(params):
    """Pack every parameter into one (TOTAL_ROWS, 128) f32 blob (done once)."""
    blob = jnp.zeros((TOTAL_ROWS, PLANES), jnp.float32)

    def put(b, row, arr):
        arr = jnp.asarray(arr, jnp.float32)
        if arr.ndim == 1:
            arr = arr[None, :]
        return b.at[row:row + arr.shape[0], :arr.shape[1]].set(arr)

    blob = put(blob, R_WORD, params['word_emb'])           # rows 100..103 stay 0
    for l in range(NUM_LAYERS):
        base = R_LAYER0 + l * LROWS
        blob = put(blob, base + RL_WQKV, params['wqkv'][l])
        blob = put(blob, base + RL_WO, params['wo'][l])
        blob = put(blob, base + RL_W1, params['w1'][l])
        blob = put(blob, base + RL_W2, params['w2'][l])
    blob = put(blob, R_POOLW, params['pool_w'])
    blob = put(blob, R_CLSW1, params['cls_w1'])
    blob = put(blob, R_CLSW2, params['cls_w2'])
    blob = put(blob, R_POS, jnp.tile(params['pos_emb'], (B, 1)))   # pre-tiled

    blob = put(blob, V_EMB_G, params['emb_ln_g'])
    blob = put(blob, V_EMB_B, params['emb_ln_b'])
    for l in range(NUM_LAYERS):
        vb = V_LAYER0 + l * VPER
        blob = put(blob, vb + V_BQKV, params['bqkv'][l])
        blob = put(blob, vb + V_BO, params['bo'][l])
        blob = put(blob, vb + V_LN1G, params['ln1_g'][l])
        blob = put(blob, vb + V_LN1B, params['ln1_b'][l])
        blob = put(blob, vb + V_B1, params['b1'][l])
        blob = put(blob, vb + V_B2, params['b2'][l])
        blob = put(blob, vb + V_LN2G, params['ln2_g'][l])
        blob = put(blob, vb + V_LN2B, params['ln2_b'][l])
    blob = put(blob, V_POOL_B, params['pool_b'])
    blob = put(blob, V_CLS_B1, params['cls_b1'])
    blob = put(blob, V_CLS_B2, params['cls_b2'])
    return blob


# ------------------------------- main -----------------------------------------

if __name__ == "__main__":
    root = jax.random.PRNGKey(0)
    k_par, k_ids, k_tfidf = jax.random.split(root, 3)

    params = init_params(k_par)
    param_blob = pack_params(params)

    bert_tokens_ids = jax.random.randint(k_ids, (B, S), 0, VOCAB, dtype=jnp.int32)
    bert_tokens_attention = jnp.ones((B, S), jnp.float32).at[1, 6:].set(0.0)
    tfidf_features = jax.random.normal(k_tfidf, (B, TFIDF_DIM), jnp.float32)

    logits = hate_speech_classifier_forward(
        param_blob, bert_tokens_ids, bert_tokens_attention, tfidf_features)
    jax.block_until_ready(logits)

    assert logits.shape == (B, NUM_CLASSES)
    assert bool(jnp.all(jnp.isfinite(logits)))
    print("KERNEL_OK")
</pallas_src>

<mosaic_0001>
module attributes {stable_mosaic.version = 11 : i64} {
  func.func @fused_kernel(%arg0: memref<16x1xi32, #tpu.memory_space<vmem>>, %arg1: memref<18x16xf32, #tpu.memory_space<vmem>>, %arg2: memref<576x128xf32, #tpu.memory_space<vmem>>, %arg3: memref<2x2xf32, #tpu.memory_space<vmem>>) attributes {dimension_semantics = [], scalar_prefetch = 0 : i64, scratch_operands = 0 : i64, tpu.core_type = #tpu.core_type<tc>} {
    %c0 = arith.constant 0 : index
    %c0_0 = arith.constant 0 : index
    %0 = vector.load %arg0[%c0, %c0_0] : memref<16x1xi32, #tpu.memory_space<vmem>>, vector<16x1xi32>
    %1 = tpu.iota {dimensions = array<i32: 1>} : vector<16x104xi32>
    %2 = vector.broadcast %0 : vector<16x1xi32> to vector<16x104xi32>
    %3 = arith.cmpi eq, %2, %1 : vector<16x104xi32>
    %4 = arith.extui %3 : vector<16x104xi1> to vector<16x104xi32>
    %5 = arith.sitofp %4 : vector<16x104xi32> to vector<16x104xf32>
    %c0_1 = arith.constant 0 : index
    %c0_2 = arith.constant 0 : index
    %6 = vector.load %arg2[%c0_1, %c0_2] : memref<576x128xf32, #tpu.memory_space<vmem>>, vector<104x32xf32>
    %cst = arith.constant dense<0.000000e+00> : vector<16x32xf32>
    %7 = tpu.matmul %5, %6, %cst {dimension_numbers = #tpu.dot_dimension_numbers<[1], [0], [0], [1], [0, 0, 1, 1], [], []>} : vector<16x104xf32>, vector<104x32xf32>, vector<16x32xf32> -> vector<16x32xf32>
    %c536 = arith.constant 536 : index
    %c0_3 = arith.constant 0 : index
    %8 = vector.load %arg2[%c536, %c0_3] : memref<576x128xf32, #tpu.memory_space<vmem>>, vector<16x32xf32>
    %9 = arith.addf %7, %8 : vector<16x32xf32>
    %c552 = arith.constant 552 : index
    %c0_4 = arith.constant 0 : index
    %10 = vector.load %arg2[%c552, %c0_4] : memref<576x128xf32, #tpu.memory_space<vmem>>, vector<1x32xf32>
    %c553 = arith.constant 553 : index
    %c0_5 = arith.constant 0 : index
    %11 = vector.load %arg2[%c553, %c0_5] : memref<576x128xf32, #tpu.memory_space<vmem>>, vector<1x32xf32>
    %cst_6 = arith.constant dense<0.000000e+00> : vector<16xf32>
    %12 = vector.multi_reduction <add>, %9, %cst_6 [1] : vector<16x32xf32> to vector<16xf32>
    %13 = vector.shape_cast %12 : vector<16xf32> to vector<16x1xf32>
    %cst_7 = arith.constant 3.200000e+01 : f32
    %14 = vector.broadcast %cst_7 : f32 to vector<16x1xf32>
    %15 = arith.divf %13, %14 : vector<16x1xf32>
    %16 = vector.broadcast %15 : vector<16x1xf32> to vector<16x32xf32>
    %17 = arith.subf %9, %16 : vector<16x32xf32>
    %18 = arith.mulf %17, %17 : vector<16x32xf32>
    %cst_8 = arith.constant dense<0.000000e+00> : vector<16xf32>
    %19 = vector.multi_reduction <add>, %18, %cst_8 [1] : vector<16x32xf32> to vector<16xf32>
    %20 = vector.shape_cast %19 : vector<16xf32> to vector<16x1xf32>
    %cst_9 = arith.constant 3.200000e+01 : f32
    %21 = vector.broadcast %cst_9 : f32 to vector<16x1xf32>
    %22 = arith.divf %20, %21 : vector<16x1xf32>
    %23 = vector.broadcast %15 : vector<16x1xf32> to vector<16x32xf32>
    %24 = arith.subf %9, %23 : vector<16x32xf32>
    %cst_10 = arith.constant 9.99999996E-13 : f32
    %25 = vector.broadcast %cst_10 : f32 to vector<16x1xf32>
    %26 = arith.addf %22, %25 : vector<16x1xf32>
    %27 = math.rsqrt %26 : vector<16x1xf32>
    %28 = vector.broadcast %27 : vector<16x1xf32> to vector<16x32xf32>
    %29 = arith.mulf %24, %28 : vector<16x32xf32>
    %30 = vector.broadcast %10 : vector<1x32xf32> to vector<16x32xf32>
    %31 = arith.mulf %29, %30 : vector<16x32xf32>
    %32 = vector.broadcast %11 : vector<1x32xf32> to vector<16x32xf32>
    %33 = arith.addf %31, %32 : vector<16x32xf32>
    %c0_11 = arith.constant 0 : index
    %c0_12 = arith.constant 0 : index
    %34 = vector.load %arg1[%c0_11, %c0_12] : memref<18x16xf32, #tpu.memory_space<vmem>>, vector<16x16xf32>
    %c104 = arith.constant 104 : index
    %c0_13 = arith.constant 0 : index
    %35 = vector.load %arg2[%c104, %c0_13] : memref<576x128xf32, #tpu.memory_space<vmem>>, vector<32x96xf32>
    %cst_14 = arith.constant dense<0.000000e+00> : vector<16x96xf32>
    %36 = tpu.matmul %33, %35, %cst_14 {dimension_numbers = #tpu.dot_dimension_numbers<[1], [0], [0], [1], [0, 0, 1, 1], [], []>} : vector<16x32xf32>, vector<32x96xf32>, vector<16x96xf32> -> vector<16x96xf32>
    %c554 = arith.constant 554 : index
    %c0_15 = arith.constant 0 : index
    %37 = vector.load %arg2[%c554, %c0_15] : memref<576x128xf32, #tpu.memory_space<vmem>>, vector<1x96xf32>
    %38 = vector.broadcast %37 : vector<1x96xf32> to vector<16x96xf32>
    %39 = arith.addf %36, %38 : vector<16x96xf32>
    %40 = vector.extract_strided_slice %39 {offsets = [0, 0], sizes = [16, 16], strides = [1, 1]} : vector<16x96xf32> to vector<16x16xf32>
    %41 = vector.extract_strided_slice %39 {offsets = [0, 32], sizes = [16, 16], strides = [1, 1]} : vector<16x96xf32> to vector<16x16xf32>
    %42 = vector.extract_strided_slice %39 {offsets = [0, 64], sizes = [16, 16], strides = [1, 1]} : vector<16x96xf32> to vector<16x16xf32>
    %cst_16 = arith.constant dense<0.000000e+00> : vector<16x16xf32>
    %43 = tpu.matmul %40, %41, %cst_16 {dimension_numbers = #tpu.dot_dimension_numbers<[1], [1], [0], [0], [0, 0, 1, 0], [], []>} : vector<16x16xf32>, vector<16x16xf32>, vector<16x16xf32> -> vector<16x16xf32>
    %cst_17 = arith.constant 2.500000e-01 : f32
    %44 = vector.broadcast %cst_17 : f32 to vector<16x16xf32>
    %45 = arith.mulf %43, %44 : vector<16x16xf32>
    %46 = arith.addf %45, %34 : vector<16x16xf32>
    %cst_18 = arith.constant dense<0xFF800000> : vector<16xf32>
    %47 = vector.multi_reduction <maximumf>, %46, %cst_18 [1] : vector<16x16xf32> to vector<16xf32>
    %48 = vector.shape_cast %47 : vector<16xf32> to vector<16x1xf32>
    %49 = vector.broadcast %48 : vector<16x1xf32> to vector<16x16xf32>
    %50 = arith.subf %46, %49 : vector<16x16xf32>
    %51 = math.exp %50 : vector<16x16xf32>
    %cst_19 = arith.constant dense<0.000000e+00> : vector<16xf32>
    %52 = vector.multi_reduction <add>, %51, %cst_19 [1] : vector<16x16xf32> to vector<16xf32>
    %53 = vector.shape_cast %52 : vector<16xf32> to vector<16x1xf32>
    %54 = vector.broadcast %53 : vector<16x1xf32> to vector<16x16xf32>
    %55 = arith.divf %51, %54 : vector<16x16xf32>
    %cst_20 = arith.constant dense<0.000000e+00> : vector<16x16xf32>
    %56 = tpu.matmul %55, %42, %cst_20 {dimension_numbers = #tpu.dot_dimension_numbers<[1], [0], [0], [1], [0, 0, 1, 1], [], []>} : vector<16x16xf32>, vector<16x16xf32>, vector<16x16xf32> -> vector<16x16xf32>
    %c136 = arith.constant 136 : index
    %c0_21 = arith.constant 0 : index
    %57 = vector.load %arg2[%c136, %c0_21] : memref<576x128xf32, #tpu.memory_space<vmem>>, vector<16x32xf32>
    %cst_22 = arith.constant dense<0.000000e+00> : vector<16x32xf32>
    %58 = tpu.matmul %56, %57, %cst_22 {dimension_numbers = #tpu.dot_dimension_numbers<[1], [0], [0], [1], [0, 0, 1, 1], [], []>} : vector<16x16xf32>, vector<16x32xf32>, vector<16x32xf32> -> vector<16x32xf32>
    %59 = vector.extract_strided_slice %39 {offsets = [0, 16], sizes = [16, 16], strides = [1, 1]} : vector<16x96xf32> to vector<16x16xf32>
    %60 = vector.extract_strided_slice %39 {offsets = [0, 48], sizes = [16, 16], strides = [1, 1]} : vector<16x96xf32> to vector<16x16xf32>
    %61 = vector.extract_strided_slice %39 {offsets = [0, 80], sizes = [16, 16], strides = [1, 1]} : vector<16x96xf32> to vector<16x16xf32>
    %cst_23 = arith.constant dense<0.000000e+00> : vector<16x16xf32>
    %62 = tpu.matmul %59, %60, %cst_23 {dimension_numbers = #tpu.dot_dimension_numbers<[1], [1], [0], [0], [0, 0, 1, 0], [], []>} : vector<16x16xf32>, vector<16x16xf32>, vector<16x16xf32> -> vector<16x16xf32>
    %cst_24 = arith.constant 2.500000e-01 : f32
    %63 = vector.broadcast %cst_24 : f32 to vector<16x16xf32>
    %64 = arith.mulf %62, %63 : vector<16x16xf32>
    %65 = arith.addf %64, %34 : vector<16x16xf32>
    %cst_25 = arith.constant dense<0xFF800000> : vector<16xf32>
    %66 = vector.multi_reduction <maximumf>, %65, %cst_25 [1] : vector<16x16xf32> to vector<16xf32>
    %67 = vector.shape_cast %66 : vector<16xf32> to vector<16x1xf32>
    %68 = vector.broadcast %67 : vector<16x1xf32> to vector<16x16xf32>
    %69 = arith.subf %65, %68 : vector<16x16xf32>
    %70 = math.exp %69 : vector<16x16xf32>
    %cst_26 = arith.constant dense<0.000000e+00> : vector<16xf32>
    %71 = vector.multi_reduction <add>, %70, %cst_26 [1] : vector<16x16xf32> to vector<16xf32>
    %72 = vector.shape_cast %71 : vector<16xf32> to vector<16x1xf32>
    %73 = vector.broadcast %72 : vector<16x1xf32> to vector<16x16xf32>
    %74 = arith.divf %70, %73 : vector<16x16xf32>
    %cst_27 = arith.constant dense<0.000000e+00> : vector<16x16xf32>
    %75 = tpu.matmul %74, %61, %cst_27 {dimension_numbers = #tpu.dot_dimension_numbers<[1], [0], [0], [1], [0, 0, 1, 1], [], []>} : vector<16x16xf32>, vector<16x16xf32>, vector<16x16xf32> -> vector<16x16xf32>
    %c152 = arith.constant 152 : index
    %c0_28 = arith.constant 0 : index
    %76 = vector.load %arg2[%c152, %c0_28] : memref<576x128xf32, #tpu.memory_space<vmem>>, vector<16x32xf32>
    %cst_29 = arith.constant dense<0.000000e+00> : vector<16x32xf32>
    %77 = tpu.matmul %75, %76, %cst_29 {dimension_numbers = #tpu.dot_dimension_numbers<[1], [0], [0], [1], [0, 0, 1, 1], [], []>} : vector<16x16xf32>, vector<16x32xf32>, vector<16x32xf32> -> vector<16x32xf32>
    %78 = arith.addf %58, %77 : vector<16x32xf32>
    %c555 = arith.constant 555 : index
    %c0_30 = arith.constant 0 : index
    %79 = vector.load %arg2[%c555, %c0_30] : memref<576x128xf32, #tpu.memory_space<vmem>>, vector<1x32xf32>
    %80 = vector.broadcast %79 : vector<1x32xf32> to vector<16x32xf32>
    %81 = arith.addf %78, %80 : vector<16x32xf32>
    %82 = arith.addf %33, %81 : vector<16x32xf32>
    %c556 = arith.constant 556 : index
    %c0_31 = arith.constant 0 : index
    %83 = vector.load %arg2[%c556, %c0_31] : memref<576x128xf32, #tpu.memory_space<vmem>>, vector<1x32xf32>
    %c557 = arith.constant 557 : index
    %c0_32 = arith.constant 0 : index
    %84 = vector.load %arg2[%c557, %c0_32] : memref<576x128xf32, #tpu.memory_space<vmem>>, vector<1x32xf32>
    %cst_33 = arith.constant dense<0.000000e+00> : vector<16xf32>
    %85 = vector.multi_reduction <add>, %82, %cst_33 [1] : vector<16x32xf32> to vector<16xf32>
    %86 = vector.shape_cast %85 : vector<16xf32> to vector<16x1xf32>
    %cst_34 = arith.constant 3.200000e+01 : f32
    %87 = vector.broadcast %cst_34 : f32 to vector<16x1xf32>
    %88 = arith.divf %86, %87 : vector<16x1xf32>
    %89 = vector.broadcast %88 : vector<16x1xf32> to vector<16x32xf32>
    %90 = arith.subf %82, %89 : vector<16x32xf32>
    %91 = arith.mulf %90, %90 : vector<16x32xf32>
    %cst_35 = arith.constant dense<0.000000e+00> : vector<16xf32>
    %92 = vector.multi_reduction <add>, %91, %cst_35 [1] : vector<16x32xf32> to vector<16xf32>
    %93 = vector.shape_cast %92 : vector<16xf32> to vector<16x1xf32>
    %cst_36 = arith.constant 3.200000e+01 : f32
    %94 = vector.broadcast %cst_36 : f32 to vector<16x1xf32>
    %95 = arith.divf %93, %94 : vector<16x1xf32>
    %96 = vector.broadcast %88 : vector<16x1xf32> to vector<16x32xf32>
    %97 = arith.subf %82, %96 : vector<16x32xf32>
    %cst_37 = arith.constant 9.99999996E-13 : f32
    %98 = vector.broadcast %cst_37 : f32 to vector<16x1xf32>
    %99 = arith.addf %95, %98 : vector<16x1xf32>
    %100 = math.rsqrt %99 : vector<16x1xf32>
    %101 = vector.broadcast %100 : vector<16x1xf32> to vector<16x32xf32>
    %102 = arith.mulf %97, %101 : vector<16x32xf32>
    %103 = vector.broadcast %83 : vector<1x32xf32> to vector<16x32xf32>
    %104 = arith.mulf %102, %103 : vector<16x32xf32>
    %105 = vector.broadcast %84 : vector<1x32xf32> to vector<16x32xf32>
    %106 = arith.addf %104, %105 : vector<16x32xf32>
    %c168 = arith.constant 168 : index
    %c0_38 = arith.constant 0 : index
    %107 = vector.load %arg2[%c168, %c0_38] : memref<576x128xf32, #tpu.memory_space<vmem>>, vector<32x64xf32>
    %cst_39 = arith.constant dense<0.000000e+00> : vector<16x64xf32>
    %108 = tpu.matmul %106, %107, %cst_39 {dimension_numbers = #tpu.dot_dimension_numbers<[1], [0], [0], [1], [0, 0, 1, 1], [], []>} : vector<16x32xf32>, vector<32x64xf32>, vector<16x64xf32> -> vector<16x64xf32>
    %c558 = arith.constant 558 : index
    %c0_40 = arith.constant 0 : index
    %109 = vector.load %arg2[%c558, %c0_40] : memref<576x128xf32, #tpu.memory_space<vmem>>, vector<1x64xf32>
    %110 = vector.broadcast %109 : vector<1x64xf32> to vector<16x64xf32>
    %111 = arith.addf %108, %110 : vector<16x64xf32>
    %112 = arith.mulf %111, %111 : vector<16x64xf32>
    %113 = arith.mulf %111, %112 : vector<16x64xf32>
    %cst_41 = arith.constant 4.471500e-02 : f32
    %114 = vector.broadcast %cst_41 : f32 to vector<16x64xf32>
    %115 = arith.mulf %114, %113 : vector<16x64xf32>
    %116 = arith.addf %111, %115 : vector<16x64xf32>
    %cst_42 = arith.constant 0.797884583 : f32
    %117 = vector.broadcast %cst_42 : f32 to vector<16x64xf32>
    %118 = arith.mulf %117, %116 : vector<16x64xf32>
    %119 = math.tanh %118 : vector<16x64xf32>
    %cst_43 = arith.constant 1.000000e+00 : f32
    %120 = vector.broadcast %cst_43 : f32 to vector<16x64xf32>
    %121 = arith.addf %120, %119 : vector<16x64xf32>
    %cst_44 = arith.constant 5.000000e-01 : f32
    %122 = vector.broadcast %cst_44 : f32 to vector<16x64xf32>
    %123 = arith.mulf %122, %121 : vector<16x64xf32>
    %124 = arith.mulf %111, %123 : vector<16x64xf32>
    %c200 = arith.constant 200 : index
    %c0_45 = arith.constant 0 : index
    %125 = vector.load %arg2[%c200, %c0_45] : memref<576x128xf32, #tpu.memory_space<vmem>>, vector<64x32xf32>
    %cst_46 = arith.constant dense<0.000000e+00> : vector<16x32xf32>
    %126 = tpu.matmul %124, %125, %cst_46 {dimension_numbers = #tpu.dot_dimension_numbers<[1], [0], [0], [1], [0, 0, 1, 1], [], []>} : vector<16x64xf32>, vector<64x32xf32>, vector<16x32xf32> -> vector<16x32xf32>
    %c559 = arith.constant 559 : index
    %c0_47 = arith.constant 0 : index
    %127 = vector.load %arg2[%c559, %c0_47] : memref<576x128xf32, #tpu.memory_space<vmem>>, vector<1x32xf32>
    %128 = vector.broadcast %127 : vector<1x32xf32> to vector<16x32xf32>
    %129 = arith.addf %126, %128 : vector<16x32xf32>
    %130 = arith.addf %106, %129 : vector<16x32xf32>
    %c560 = arith.constant 560 : index
    %c0_48 = arith.constant 0 : index
    %131 = vector.load %arg2[%c560, %c0_48] : memref<576x128xf32, #tpu.memory_space<vmem>>, vector<1x32xf32>
    %c561 = arith.constant 561 : index
    %c0_49 = arith.constant 0 : index
    %132 = vector.load %arg2[%c561, %c0_49] : memref<576x128xf32, #tpu.memory_space<vmem>>, vector<1x32xf32>
    %cst_50 = arith.constant dense<0.000000e+00> : vector<16xf32>
    %133 = vector.multi_reduction <add>, %130, %cst_50 [1] : vector<16x32xf32> to vector<16xf32>
    %134 = vector.shape_cast %133 : vector<16xf32> to vector<16x1xf32>
    %cst_51 = arith.constant 3.200000e+01 : f32
    %135 = vector.broadcast %cst_51 : f32 to vector<16x1xf32>
    %136 = arith.divf %134, %135 : vector<16x1xf32>
    %137 = vector.broadcast %136 : vector<16x1xf32> to vector<16x32xf32>
    %138 = arith.subf %130, %137 : vector<16x32xf32>
    %139 = arith.mulf %138, %138 : vector<16x32xf32>
    %cst_52 = arith.constant dense<0.000000e+00> : vector<16xf32>
    %140 = vector.multi_reduction <add>, %139, %cst_52 [1] : vector<16x32xf32> to vector<16xf32>
    %141 = vector.shape_cast %140 : vector<16xf32> to vector<16x1xf32>
    %cst_53 = arith.constant 3.200000e+01 : f32
    %142 = vector.broadcast %cst_53 : f32 to vector<16x1xf32>
    %143 = arith.divf %141, %142 : vector<16x1xf32>
    %144 = vector.broadcast %136 : vector<16x1xf32> to vector<16x32xf32>
    %145 = arith.subf %130, %144 : vector<16x32xf32>
    %cst_54 = arith.constant 9.99999996E-13 : f32
    %146 = vector.broadcast %cst_54 : f32 to vector<16x1xf32>
    %147 = arith.addf %143, %146 : vector<16x1xf32>
    %148 = math.rsqrt %147 : vector<16x1xf32>
    %149 = vector.broadcast %148 : vector<16x1xf32> to vector<16x32xf32>
    %150 = arith.mulf %145, %149 : vector<16x32xf32>
    %151 = vector.broadcast %131 : vector<1x32xf32> to vector<16x32xf32>
    %152 = arith.mulf %150, %151 : vector<16x32xf32>
    %153 = vector.broadcast %132 : vector<1x32xf32> to vector<16x32xf32>
    %154 = arith.addf %152, %153 : vector<16x32xf32>
    %c264 = arith.constant 264 : index
    %c0_55 = arith.constant 0 : index
    %155 = vector.load %arg2[%c264, %c0_55] : memref<576x128xf32, #tpu.memory_space<vmem>>, vector<32x96xf32>
    %cst_56 = arith.constant dense<0.000000e+00> : vector<16x96xf32>
    %156 = tpu.matmul %154, %155, %cst_56 {dimension_numbers = #tpu.dot_dimension_numbers<[1], [0], [0], [1], [0, 0, 1, 1], [], []>} : vector<16x32xf32>, vector<32x96xf32>, vector<16x96xf32> -> vector<16x96xf32>
    %c562 = arith.constant 562 : index
    %c0_57 = arith.constant 0 : index
    %157 = vector.load %arg2[%c562, %c0_57] : memref<576x128xf32, #tpu.memory_space<vmem>>, vector<1x96xf32>
    %158 = vector.broadcast %157 : vector<1x96xf32> to vector<16x96xf32>
    %159 = arith.addf %156, %158 : vector<16x96xf32>
    %160 = vector.extract_strided_slice %159 {offsets = [0, 0], sizes = [16, 16], strides = [1, 1]} : vector<16x96xf32> to vector<16x16xf32>
    %161 = vector.extract_strided_slice %159 {offsets = [0, 32], sizes = [16, 16], strides = [1, 1]} : vector<16x96xf32> to vector<16x16xf32>
    %162 = vector.extract_strided_slice %159 {offsets = [0, 64], sizes = [16, 16], strides = [1, 1]} : vector<16x96xf32> to vector<16x16xf32>
    %cst_58 = arith.constant dense<0.000000e+00> : vector<16x16xf32>
    %163 = tpu.matmul %160, %161, %cst_58 {dimension_numbers = #tpu.dot_dimension_numbers<[1], [1], [0], [0], [0, 0, 1, 0], [], []>} : vector<16x16xf32>, vector<16x16xf32>, vector<16x16xf32> -> vector<16x16xf32>
    %cst_59 = arith.constant 2.500000e-01 : f32
    %164 = vector.broadcast %cst_59 : f32 to vector<16x16xf32>
    %165 = arith.mulf %163, %164 : vector<16x16xf32>
    %166 = arith.addf %165, %34 : vector<16x16xf32>
    %cst_60 = arith.constant dense<0xFF800000> : vector<16xf32>
    %167 = vector.multi_reduction <maximumf>, %166, %cst_60 [1] : vector<16x16xf32> to vector<16xf32>
    %168 = vector.shape_cast %167 : vector<16xf32> to vector<16x1xf32>
    %169 = vector.broadcast %168 : vector<16x1xf32> to vector<16x16xf32>
    %170 = arith.subf %166, %169 : vector<16x16xf32>
    %171 = math.exp %170 : vector<16x16xf32>
    %cst_61 = arith.constant dense<0.000000e+00> : vector<16xf32>
    %172 = vector.multi_reduction <add>, %171, %cst_61 [1] : vector<16x16xf32> to vector<16xf32>
    %173 = vector.shape_cast %172 : vector<16xf32> to vector<16x1xf32>
    %174 = vector.broadcast %173 : vector<16x1xf32> to vector<16x16xf32>
    %175 = arith.divf %171, %174 : vector<16x16xf32>
    %cst_62 = arith.constant dense<0.000000e+00> : vector<16x16xf32>
    %176 = tpu.matmul %175, %162, %cst_62 {dimension_numbers = #tpu.dot_dimension_numbers<[1], [0], [0], [1], [0, 0, 1, 1], [], []>} : vector<16x16xf32>, vector<16x16xf32>, vector<16x16xf32> -> vector<16x16xf32>
    %c296 = arith.constant 296 : index
    %c0_63 = arith.constant 0 : index
    %177 = vector.load %arg2[%c296, %c0_63] : memref<576x128xf32, #tpu.memory_space<vmem>>, vector<16x32xf32>
    %cst_64 = arith.constant dense<0.000000e+00> : vector<16x32xf32>
    %178 = tpu.matmul %176, %177, %cst_64 {dimension_numbers = #tpu.dot_dimension_numbers<[1], [0], [0], [1], [0, 0, 1, 1], [], []>} : vector<16x16xf32>, vector<16x32xf32>, vector<16x32xf32> -> vector<16x32xf32>
    %179 = vector.extract_strided_slice %159 {offsets = [0, 16], sizes = [16, 16], strides = [1, 1]} : vector<16x96xf32> to vector<16x16xf32>
    %180 = vector.extract_strided_slice %159 {offsets = [0, 48], sizes = [16, 16], strides = [1, 1]} : vector<16x96xf32> to vector<16x16xf32>
    %181 = vector.extract_strided_slice %159 {offsets = [0, 80], sizes = [16, 16], strides = [1, 1]} : vector<16x96xf32> to vector<16x16xf32>
    %cst_65 = arith.constant dense<0.000000e+00> : vector<16x16xf32>
    %182 = tpu.matmul %179, %180, %cst_65 {dimension_numbers = #tpu.dot_dimension_numbers<[1], [1], [0], [0], [0, 0, 1, 0], [], []>} : vector<16x16xf32>, vector<16x16xf32>, vector<16x16xf32> -> vector<16x16xf32>
    %cst_66 = arith.constant 2.500000e-01 : f32
    %183 = vector.broadcast %cst_66 : f32 to vector<16x16xf32>
    %184 = arith.mulf %182, %183 : vector<16x16xf32>
    %185 = arith.addf %184, %34 : vector<16x16xf32>
    %cst_67 = arith.constant dense<0xFF800000> : vector<16xf32>
    %186 = vector.multi_reduction <maximumf>, %185, %cst_67 [1] : vector<16x16xf32> to vector<16xf32>
    %187 = vector.shape_cast %186 : vector<16xf32> to vector<16x1xf32>
    %188 = vector.broadcast %187 : vector<16x1xf32> to vector<16x16xf32>
    %189 = arith.subf %185, %188 : vector<16x16xf32>
    %190 = math.exp %189 : vector<16x16xf32>
    %cst_68 = arith.constant dense<0.000000e+00> : vector<16xf32>
    %191 = vector.multi_reduction <add>, %190, %cst_68 [1] : vector<16x16xf32> to vector<16xf32>
    %192 = vector.shape_cast %191 : vector<16xf32> to vector<16x1xf32>
    %193 = vector.broadcast %192 : vector<16x1xf32> to vector<16x16xf32>
    %194 = arith.divf %190, %193 : vector<16x16xf32>
    %cst_69 = arith.constant dense<0.000000e+00> : vector<16x16xf32>
    %195 = tpu.matmul %194, %181, %cst_69 {dimension_numbers = #tpu.dot_dimension_numbers<[1], [0], [0], [1], [0, 0, 1, 1], [], []>} : vector<16x16xf32>, vector<16x16xf32>, vector<16x16xf32> -> vector<16x16xf32>
    %c312 = arith.constant 312 : index
    %c0_70 = arith.constant 0 : index
    %196 = vector.load %arg2[%c312, %c0_70] : memref<576x128xf32, #tpu.memory_space<vmem>>, vector<16x32xf32>
    %cst_71 = arith.constant dense<0.000000e+00> : vector<16x32xf32>
    %197 = tpu.matmul %195, %196, %cst_71 {dimension_numbers = #tpu.dot_dimension_numbers<[1], [0], [0], [1], [0, 0, 1, 1], [], []>} : vector<16x16xf32>, vector<16x32xf32>, vector<16x32xf32> -> vector<16x32xf32>
    %198 = arith.addf %178, %197 : vector<16x32xf32>
    %c563 = arith.constant 563 : index
    %c0_72 = arith.constant 0 : index
    %199 = vector.load %arg2[%c563, %c0_72] : memref<576x128xf32, #tpu.memory_space<vmem>>, vector<1x32xf32>
    %200 = vector.broadcast %199 : vector<1x32xf32> to vector<16x32xf32>
    %201 = arith.addf %198, %200 : vector<16x32xf32>
    %202 = arith.addf %154, %201 : vector<16x32xf32>
    %c564 = arith.constant 564 : index
    %c0_73 = arith.constant 0 : index
    %203 = vector.load %arg2[%c564, %c0_73] : memref<576x128xf32, #tpu.memory_space<vmem>>, vector<1x32xf32>
    %c565 = arith.constant 565 : index
    %c0_74 = arith.constant 0 : index
    %204 = vector.load %arg2[%c565, %c0_74] : memref<576x128xf32, #tpu.memory_space<vmem>>, vector<1x32xf32>
    %cst_75 = arith.constant dense<0.000000e+00> : vector<16xf32>
    %205 = vector.multi_reduction <add>, %202, %cst_75 [1] : vector<16x32xf32> to vector<16xf32>
    %206 = vector.shape_cast %205 : vector<16xf32> to vector<16x1xf32>
    %cst_76 = arith.constant 3.200000e+01 : f32
    %207 = vector.broadcast %cst_76 : f32 to vector<16x1xf32>
    %208 = arith.divf %206, %207 : vector<16x1xf32>
    %209 = vector.broadcast %208 : vector<16x1xf32> to vector<16x32xf32>
    %210 = arith.subf %202, %209 : vector<16x32xf32>
    %211 = arith.mulf %210, %210 : vector<16x32xf32>
    %cst_77 = arith.constant dense<0.000000e+00> : vector<16xf32>
    %212 = vector.multi_reduction <add>, %211, %cst_77 [1] : vector<16x32xf32> to vector<16xf32>
    %213 = vector.shape_cast %212 : vector<16xf32> to vector<16x1xf32>
    %cst_78 = arith.constant 3.200000e+01 : f32
    %214 = vector.broadcast %cst_78 : f32 to vector<16x1xf32>
    %215 = arith.divf %213, %214 : vector<16x1xf32>
    %216 = vector.broadcast %208 : vector<16x1xf32> to vector<16x32xf32>
    %217 = arith.subf %202, %216 : vector<16x32xf32>
    %cst_79 = arith.constant 9.99999996E-13 : f32
    %218 = vector.broadcast %cst_79 : f32 to vector<16x1xf32>
    %219 = arith.addf %215, %218 : vector<16x1xf32>
    %220 = math.rsqrt %219 : vector<16x1xf32>
    %221 = vector.broadcast %220 : vector<16x1xf32> to vector<16x32xf32>
    %222 = arith.mulf %217, %221 : vector<16x32xf32>
    %223 = vector.broadcast %203 : vector<1x32xf32> to vector<16x32xf32>
    %224 = arith.mulf %222, %223 : vector<16x32xf32>
    %225 = vector.broadcast %204 : vector<1x32xf32> to vector<16x32xf32>
    %226 = arith.addf %224, %225 : vector<16x32xf32>
    %c328 = arith.constant 328 : index
    %c0_80 = arith.constant 0 : index
    %227 = vector.load %arg2[%c328, %c0_80] : memref<576x128xf32, #tpu.memory_space<vmem>>, vector<32x64xf32>
    %cst_81 = arith.constant dense<0.000000e+00> : vector<16x64xf32>
    %228 = tpu.matmul %226, %227, %cst_81 {dimension_numbers = #tpu.dot_dimension_numbers<[1], [0], [0], [1], [0, 0, 1, 1], [], []>} : vector<16x32xf32>, vector<32x64xf32>, vector<16x64xf32> -> vector<16x64xf32>
    %c566 = arith.constant 566 : index
    %c0_82 = arith.constant 0 : index
    %229 = vector.load %arg2[%c566, %c0_82] : memref<576x128xf32, #tpu.memory_space<vmem>>, vector<1x64xf32>
    %230 = vector.broadcast %229 : vector<1x64xf32> to vector<16x64xf32>
    %231 = arith.addf %228, %230 : vector<16x64xf32>
    %232 = arith.mulf %231, %231 : vector<16x64xf32>
    %233 = arith.mulf %231, %232 : vector<16x64xf32>
    %cst_83 = arith.constant 4.471500e-02 : f32
    %234 = vector.broadcast %cst_83 : f32 to vector<16x64xf32>
    %235 = arith.mulf %234, %233 : vector<16x64xf32>
    %236 = arith.addf %231, %235 : vector<16x64xf32>
    %cst_84 = arith.constant 0.797884583 : f32
    %237 = vector.broadcast %cst_84 : f32 to vector<16x64xf32>
    %238 = arith.mulf %237, %236 : vector<16x64xf32>
    %239 = math.tanh %238 : vector<16x64xf32>
    %cst_85 = arith.constant 1.000000e+00 : f32
    %240 = vector.broadcast %cst_85 : f32 to vector<16x64xf32>
    %241 = arith.addf %240, %239 : vector<16x64xf32>
    %cst_86 = arith.constant 5.000000e-01 : f32
    %242 = vector.broadcast %cst_86 : f32 to vector<16x64xf32>
    %243 = arith.mulf %242, %241 : vector<16x64xf32>
    %244 = arith.mulf %231, %243 : vector<16x64xf32>
    %c360 = arith.constant 360 : index
    %c0_87 = arith.constant 0 : index
    %245 = vector.load %arg2[%c360, %c0_87] : memref<576x128xf32, #tpu.memory_space<vmem>>, vector<64x32xf32>
    %cst_88 = arith.constant dense<0.000000e+00> : vector<16x32xf32>
    %246 = tpu.matmul %244, %245, %cst_88 {dimension_numbers = #tpu.dot_dimension_numbers<[1], [0], [0], [1], [0, 0, 1, 1], [], []>} : vector<16x64xf32>, vector<64x32xf32>, vector<16x32xf32> -> vector<16x32xf32>
    %c567 = arith.constant 567 : index
    %c0_89 = arith.constant 0 : index
    %247 = vector.load %arg2[%c567, %c0_89] : memref<576x128xf32, #tpu.memory_space<vmem>>, vector<1x32xf32>
    %248 = vector.broadcast %247 : vector<1x32xf32> to vector<16x32xf32>
    %249 = arith.addf %246, %248 : vector<16x32xf32>
    %250 = arith.addf %226, %249 : vector<16x32xf32>
    %c568 = arith.constant 568 : index
    %c0_90 = arith.constant 0 : index
    %251 = vector.load %arg2[%c568, %c0_90] : memref<576x128xf32, #tpu.memory_space<vmem>>, vector<1x32xf32>
    %c569 = arith.constant 569 : index
    %c0_91 = arith.constant 0 : index
    %252 = vector.load %arg2[%c569, %c0_91] : memref<576x128xf32, #tpu.memory_space<vmem>>, vector<1x32xf32>
    %cst_92 = arith.constant dense<0.000000e+00> : vector<16xf32>
    %253 = vector.multi_reduction <add>, %250, %cst_92 [1] : vector<16x32xf32> to vector<16xf32>
    %254 = vector.shape_cast %253 : vector<16xf32> to vector<16x1xf32>
    %cst_93 = arith.constant 3.200000e+01 : f32
    %255 = vector.broadcast %cst_93 : f32 to vector<16x1xf32>
    %256 = arith.divf %254, %255 : vector<16x1xf32>
    %257 = vector.broadcast %256 : vector<16x1xf32> to vector<16x32xf32>
    %258 = arith.subf %250, %257 : vector<16x32xf32>
    %259 = arith.mulf %258, %258 : vector<16x32xf32>
    %cst_94 = arith.constant dense<0.000000e+00> : vector<16xf32>
    %260 = vector.multi_reduction <add>, %259, %cst_94 [1] : vector<16x32xf32> to vector<16xf32>
    %261 = vector.shape_cast %260 : vector<16xf32> to vector<16x1xf32>
    %cst_95 = arith.constant 3.200000e+01 : f32
    %262 = vector.broadcast %cst_95 : f32 to vector<16x1xf32>
    %263 = arith.divf %261, %262 : vector<16x1xf32>
    %264 = vector.broadcast %256 : vector<16x1xf32> to vector<16x32xf32>
    %265 = arith.subf %250, %264 : vector<16x32xf32>
    %cst_96 = arith.constant 9.99999996E-13 : f32
    %266 = vector.broadcast %cst_96 : f32 to vector<16x1xf32>
    %267 = arith.addf %263, %266 : vector<16x1xf32>
    %268 = math.rsqrt %267 : vector<16x1xf32>
    %269 = vector.broadcast %268 : vector<16x1xf32> to vector<16x32xf32>
    %270 = arith.mulf %265, %269 : vector<16x32xf32>
    %271 = vector.broadcast %251 : vector<1x32xf32> to vector<16x32xf32>
    %272 = arith.mulf %270, %271 : vector<16x32xf32>
    %273 = vector.broadcast %252 : vector<1x32xf32> to vector<16x32xf32>
    %274 = arith.addf %272, %273 : vector<16x32xf32>
    %275 = vector.shape_cast %274 : vector<16x32xf32> to vector<2x8x32xf32>
    %276 = vector.extract_strided_slice %275 {offsets = [0, 0, 0], sizes = [2, 1, 32], strides = [1, 1, 1]} : vector<2x8x32xf32> to vector<2x1x32xf32>
    %277 = vector.shape_cast %276 : vector<2x1x32xf32> to vector<2x32xf32>
    %c424 = arith.constant 424 : index
    %c0_97 = arith.constant 0 : index
    %278 = vector.load %arg2[%c424, %c0_97] : memref<576x128xf32, #tpu.memory_space<vmem>>, vector<32x32xf32>
    %cst_98 = arith.constant dense<0.000000e+00> : vector<2x32xf32>
    %279 = tpu.matmul %277, %278, %cst_98 {dimension_numbers = #tpu.dot_dimension_numbers<[1], [0], [0], [1], [0, 0, 1, 1], [], []>} : vector<2x32xf32>, vector<32x32xf32>, vector<2x32xf32> -> vector<2x32xf32>
    %c570 = arith.constant 570 : index
    %c0_99 = arith.constant 0 : index
    %280 = vector.load %arg2[%c570, %c0_99] : memref<576x128xf32, #tpu.memory_space<vmem>>, vector<1x32xf32>
    %281 = vector.broadcast %280 : vector<1x32xf32> to vector<2x32xf32>
    %282 = arith.addf %279, %281 : vector<2x32xf32>
    %283 = math.tanh %282 : vector<2x32xf32>
    %c16 = arith.constant 16 : index
    %c0_100 = arith.constant 0 : index
    %284 = vector.load %arg1[%c16, %c0_100] : memref<18x16xf32, #tpu.memory_space<vmem>>, vector<2x16xf32>
    %285 = tpu.concatenate %283, %284 in 1 : vector<2x32xf32>, vector<2x16xf32> -> vector<2x48xf32>
    %c456 = arith.constant 456 : index
    %c0_101 = arith.constant 0 : index
    %286 = vector.load %arg2[%c456, %c0_101] : memref<576x128xf32, #tpu.memory_space<vmem>>, vector<48x32xf32>
    %cst_102 = arith.constant dense<0.000000e+00> : vector<2x32xf32>
    %287 = tpu.matmul %285, %286, %cst_102 {dimension_numbers = #tpu.dot_dimension_numbers<[1], [0], [0], [1], [0, 0, 1, 1], [], []>} : vector<2x48xf32>, vector<48x32xf32>, vector<2x32xf32> -> vector<2x32xf32>
    %c571 = arith.constant 571 : index
    %c0_103 = arith.constant 0 : index
    %288 = vector.load %arg2[%c571, %c0_103] : memref<576x128xf32, #tpu.memory_space<vmem>>, vector<1x32xf32>
    %289 = vector.broadcast %288 : vector<1x32xf32> to vector<2x32xf32>
    %290 = arith.addf %287, %289 : vector<2x32xf32>
    %cst_104 = arith.constant 0.000000e+00 : f32
    %291 = vector.broadcast %cst_104 : f32 to vector<2x32xf32>
    %292 = arith.maximumf %290, %291 : vector<2x32xf32>
    %c504 = arith.constant 504 : index
    %c0_105 = arith.constant 0 : index
    %293 = vector.load %arg2[%c504, %c0_105] : memref<576x128xf32, #tpu.memory_space<vmem>>, vector<32x2xf32>
    %cst_106 = arith.constant dense<0.000000e+00> : vector<2x2xf32>
    %294 = tpu.matmul %292, %293, %cst_106 {dimension_numbers = #tpu.dot_dimension_numbers<[1], [0], [0], [1], [0, 0, 1, 1], [], []>} : vector<2x32xf32>, vector<32x2xf32>, vector<2x2xf32> -> vector<2x2xf32>
    %c572 = arith.constant 572 : index
    %c0_107 = arith.constant 0 : index
    %295 = vector.load %arg2[%c572, %c0_107] : memref<576x128xf32, #tpu.memory_space<vmem>>, vector<1x2xf32>
    %296 = vector.broadcast %295 : vector<1x2xf32> to vector<2x2xf32>
    %297 = arith.addf %294, %296 : vector<2x2xf32>
    %c0_108 = arith.constant 0 : index
    %c0_109 = arith.constant 0 : index
    %298 = vector.load %arg3[%c0_108, %c0_109] : memref<2x2xf32, #tpu.memory_space<vmem>>, vector<2x2xf32>
    tpu.vector_store %arg3[%c0_108, %c0_109], %297 {strides = array<i32>} : memref<2x2xf32, #tpu.memory_space<vmem>>, vector<2x2xf32>,
    return
  }
}

</mosaic_0001>

<bundles_post_ra>
// kernel: tpu_custom_call.1
= control target key start
LH: loop header
LB: loop body
LE: loop exit
PB: predicated region body
PF: predicated region fallthrough
CT: control target
= control target key end

     0   :  { %8 = vsyncpa [#allocation3], 0  ;;  %s1841_s0 = inlined_call_operand.vmem [shape: s32[16,1], index: 0, kind: input, shape index: {}]   ;;  %s1842_s1 = inlined_call_operand.vmem [shape: f32[18,16], index: 1, kind: input, shape index: {}]   ;;  %s1843_s2 = inlined_call_operand.hbm [shape: f32[576,128], index: 2, kind: input, shape index: {}]   ;;  %s1844_s3 = inlined_call_operand.hbm [shape: f32[2,2], index: 3, kind: output, shape index: {}]  }
   0x1   :  { %9 = vsyncpa [#allocation4], 0  ;;  %s18_s14 = sshll.u32 %s1843_s2, 4  ;;  %s1601_s15 = smov [#allocation2]   ;;  %s19_s14 = int_to_ptr.hbm [resolvable:$true] %s18_s14 }
   0x2   :  { %s20_s16 = sshll.u32 %s1601_s15, 4  ;;  %s1602_s17 = smov 128   ;;  %s21_s16 = int_to_ptr.vmem [resolvable:$true] %s20_s16 }
   0x3   :  { %s1603_s18 = smov 8  }
   0x4   :  { %26 = dma.hbm_to_vmem [thread:$0]  %s19_s14, 9216, %s21_s16, [#allocation3], %s1602_s17, %s1602_s17, %s1603_s18  }
   0x5   :  { %1597 = dma.done.wait [#allocation3], 9216  }
   0x6   :  { %1598 = vsyncadd [#allocation3], 4294958080  ;;  %v1604_v0 = vmov 0   ;;  %v31_v1 = vld [vmem:[%s1841_s0] sm:$0xff]  ;;  %v58_v3 = vld [vmem:[#allocation2 + $0x58] sm:$0xff]  ;;  %v33_v16 = vlaneseq  ;;  %vm62_vm0 = vcmask 850944  }
   0x7   :  { %1443 = vset.pattern.permute.xlu0 %v1604_v0  ;;  %v59_v2 = vld [vmem:[#allocation2 + $0x60] sm:$0xff]  ;;  %v57_v4 = vld [vmem:[#allocation2 + $0x50] sm:$0xff]  ;;  %v32_v5 = vld [vmem:[%s1841_s0 + $0x8] sm:$0xff]  ;;  %v1605_v19 = vmov 0.0   ;;  %vm94_vm3 = vcmask 261120   ;;  %v1606_v31 = vmov 32.0  }
   0x8   :  { %36 = vperm.xlu0 %1443, %v31_v1   ;;  %72 = vmatpush.msra.mxu0 %v59_v2  ;;  %v56_v6 = vld [vmem:[#allocation2 + $0x48] sm:$0xff]  ;;  %v55_v7 = vld [vmem:[#allocation2 + $0x40] sm:$0xff]  ;;  %v54_v8 = vld [vmem:[#allocation2 + $0x38] sm:$0xff]  ;;  %v34_v17 = vand.u32 127, %v33_v16  ;;  %1485 = vrcp.f32 %v1606_v31  ;;  %s1607_s0 = smov 96   ;;  %s1608_s22 = smov 80  }
   0x9   :  { %v53_v9 = vld [vmem:[#allocation2 + $0x30] sm:$0xff]  ;;  %v52_v10 = vld [vmem:[#allocation2 + $0x28] sm:$0xff]  ;;  %v51_v11 = vld [vmem:[#allocation2 + $0x20] sm:$0xff]  ;;  %s1609_s23 = smov 112   ;;  %vm195_vm11 = vcmask 130048   ;;  %s1610_s28 = smov 64  }
   0xa   :  { %73 = vmatpush.msra.mxu0 %v58_v3  ;;  %v50_v12 = vld [vmem:[#allocation2 + $0x18] sm:$0xff]  ;;  %v49_v13 = vld [vmem:[#allocation2 + $0x10] sm:$0xff]  ;;  %v48_v14 = vld [vmem:[#allocation2 + $0x8] sm:$0xff]  ;;  %s1611_s29 = smov 48   ;;  %s1612_s5 = smov 32  }
   0xb   :  { %v47_v15 = vld [vmem:[#allocation2] sm:$0xff]  ;;  %v60_v23 = vld [vmem:[#allocation2 + $0x218] sm:$0xff]  ;;  %v155_v50 = vld [vmem:[#allocation2 + $0x70] sm:$0xff]  ;;  %s1369_s9 = sshll.u32 %s1844_s3, 4  ;;  %s1370_s9 = int_to_ptr.hbm [resolvable:$true] %s1369_s9 }
   0xc   :  { %74 = vmatpush.msra.mxu0 %v57_v4  ;;  %v61_v27 = vld [vmem:[#allocation2 + $0x220] sm:$0xff]  ;;  %v156_v49 = vld [vmem:[#allocation2 + $0x78] sm:$0xff]  ;;  %v154_v51 = vld [vmem:[#allocation2 + $0x68] sm:$0xff] }
   0xd   :  { %v157_v48 = vld [vmem:[#allocation2 + $0x80] sm:$0xff]  ;;  %v1464_v2 = vld [vmem:[#allocation2 + $0x228] ss:$0 sm:$0xff]  ;;  %v1466_v16 = vld [vmem:[#allocation2 + $0x22a] ss:$0 sm:$0xff] }
   0xe   :  { %75 = vmatpush.msra.mxu0 %v56_v6  ;;  %v1486_v32 = vpop.eup %1485  ;;  %178 = vmatpush.msra.mxu1 %v157_v48  ;;  %v1465_v6 = vld [vmem:[#allocation2 + $0x229] ss:$0 sm:$0xff] }
   0xf   :  { %v102_v33 = vmul.f32 32.0, %v1486_v32  ;;  %vm106_vm4 = vweird.f32 %v1486_v32 }
  0x10   :  { %39 = vperm.xlu0 %1443, %v32_v5   ;;  %76 = vmatpush.msra.mxu0 %v55_v7 }
  0x11   :  { %v103_v34 = vsub.f32 1.0, %v102_v33  ;;  %179 = vmatpush.msra.mxu1 %v156_v49 }
  0x12   :  { %77 = vmatpush.msra.mxu0 %v54_v8 }
  0x13   :  { %v104_v35 = vmul.f32 %v1486_v32, %v103_v34  ;;  %180 = vmatpush.msra.mxu1 %v155_v50 }
  0x14   :  { %78 = vmatpush.msra.mxu0 %v53_v9 }
  0x15   :  { %v105_v36 = vadd.f32 %v1486_v32, %v104_v35  ;;  %181 = vmatpush.msra.mxu1 %v154_v51 }
  0x16   :  { %79 = vmatpush.msra.mxu0 %v52_v10 }
  0x17   :  { %v1645_v37 = vsel %vm106_vm4, %v1486_v32, %v105_v36 }
  0x18   :  { %80 = vmatpush.msra.mxu0 %v51_v11 }
  0x1a   :  { %81 = vmatpush.msra.mxu0 %v50_v12 }
  0x1c   :  { %82 = vmatpush.msra.mxu0 %v49_v13 }
  0x1e   :  { %83 = vmatpush.msra.mxu0 %v48_v14 }
  0x20   :  { %84 = vmatpush.msra.mxu0 %v47_v15 }
  0x7a   :  { %v37_v18 = vpop.permute.xlu0 %36 }
  0x7b   :  { %vm41_vm1 = vcmp.eq.s32.totalorder %v37_v18, %v34_v17 }
  0x7c   :  { %v1379_v20 = vsel %vm41_vm1, 1.0, %v1605_v19 }
  0x7d   :  { %1381 = vmatmul.msk.f32.vlgmr.msra.gmra.mxu0 %vm62_vm0, %v1379_v20 }
  0x82   :  { %v40_v21 = vpop.permute.xlu0 %39 }
  0x83   :  { %vm42_vm2 = vcmp.eq.s32.totalorder %v40_v21, %v34_v17 }
  0x84   :  { %v1380_v22 = vsel %vm42_vm2, 1.0, %v1605_v19 }
  0x85   :  { %1382 = vmatmul.msk.f32.gmra.mxu0 %vm62_vm0, %v1380_v22 }
  0xfa   :  { %v86_v24 = vpop.f32.mrf.mxu0 }
  0xfb   :  { %v87_v25 = vadd.f32 %v86_v24, %v60_v23  ;;  %v1673_v24 = vld [vmem:[%s1842_s1] sm:$0xff] }
  0xfd   :  { %v95_v26 = vsel %vm94_vm3, %v87_v25, 0.0 }
  0xfe   :  { %96 = vadd.xlane.f32.xlu1 %v95_v26 }
 0x102   :  { %v89_v28 = vpop.f32.mrf.mxu0 }
 0x103   :  { %v90_v29 = vadd.f32 %v89_v28, %v61_v27 }
 0x105   :  { %v98_v30 = vsel %vm94_vm3, %v90_v29, 0.0 }
 0x106   :  { %99 = vadd.xlane.f32.xlu1 %v98_v30 }
 0x171   :  { %v97_v38 = vpop.xlane.xlu1 %96 }
 0x172   :  { %v108_v39 = vmul.f32 %v1645_v37, %v97_v38 }
 0x174   :  { %v110_v40 = vsub.f32 %v87_v25, %v108_v39 }
 0x176   :  { %v112_v41 = vmul.f32 %v110_v40, %v110_v40 }
 0x178   :  { %v114_v42 = vsel %vm94_vm3, %v112_v41, 0.0 }
 0x179   :  { %115 = vadd.xlane.f32.xlu2 %v114_v42  ;;  %v100_v43 = vpop.xlane.xlu1 %99 }
 0x17a   :  { %v109_v44 = vmul.f32 %v1645_v37, %v100_v43 }
 0x17c   :  { %v111_v45 = vsub.f32 %v90_v29, %v109_v44  ;;  %v1680_v29 = vld [vmem:[%s1842_s1 + $0x8] sm:$0xff] }
 0x17e   :  { %v113_v46 = vmul.f32 %v111_v45, %v111_v45 }
 0x180   :  { %v117_v47 = vsel %vm94_vm3, %v113_v46, 0.0 }
 0x181   :  { %118 = vadd.xlane.f32.xlu2 %v117_v47 }
 0x1ec   :  { %v116_v52 = vpop.xlane.xlu2 %115 }
 0x1ed   :  { %v120_v53 = vmul.f32 %v116_v52, %v1645_v37 }
 0x1ef   :  { %v122_v54 = vadd.f32 1e-12, %v120_v53 }
 0x1f1   :  { %1487 = vrsqrt.f32 %v122_v54  ;;  %vm130_vm6 = vweird.f32 %v122_v54 }
 0x1f4   :  { %v119_v55 = vpop.xlane.xlu2 %118 }
 0x1f5   :  { %v121_v56 = vmul.f32 %v119_v55, %v1645_v37 }
 0x1f7   :  { %v1488_v57 = vpop.eup %1487  ;;  %v123_v58 = vadd.f32 1e-12, %v121_v56 }
 0x1f8   :  { %v125_v59 = vmul.f32 %v1488_v57, %v122_v54  ;;  %vm131_vm5 = vweird.f32 %v1488_v57 }
 0x1f9   :  { %1489 = vrsqrt.f32 %v123_v58  ;;  %vm132_vm7 = vmor %vm130_vm6, %vm131_vm5  ;;  %vm140_vm9 = vweird.f32 %v123_v58 }
 0x1fa   :  { %v126_v60 = vmul.f32 %v1488_v57, %v125_v59 }
 0x1fc   :  { %v127_v61 = vmul.f32 0.5, %v126_v60 }
 0x1fe   :  { %v128_v62 = vsub.f32 1.5, %v127_v61 }
 0x1ff   :  { %v1490_v63 = vpop.eup %1489 }
 0x200   :  { %v129_v0 = vmul.f32 %v1488_v57, %v128_v62  ;;  %v135_v1 = vmul.f32 %v1490_v63, %v123_v58  ;;  %vm141_vm8 = vweird.f32 %v1490_v63 }
 0x201   :  { %vm142_vm10 = vmor %vm140_vm9, %vm141_vm8 }
 0x202   :  { %v133_v3 = vsel %vm132_vm7, %v1488_v57, %v129_v0  ;;  %v136_v4 = vmul.f32 %v1490_v63, %v135_v1 }
 0x203   :  { %v144_v5 = vmul.f32 %v133_v3, %v110_v40 }
 0x204   :  { %v137_v7 = vmul.f32 0.5, %v136_v4 }
 0x205   :  { %v147_v8 = vmul.f32 %v1464_v2, %v144_v5 }
 0x206   :  { %v138_v9 = vsub.f32 1.5, %v137_v7 }
 0x207   :  { %v1653_v10 = vadd.f32 %v1465_v6, %v147_v8 }
 0x208   :  { %v139_v11 = vmul.f32 %v1490_v63, %v138_v9 }
 0x209   :  { %1383 = vmatmul.msk.f32.vlgmr.msra.gmra.mxu1 %vm94_vm3, %v1653_v10 }
 0x20a   :  { %v143_v12 = vsel %vm142_vm10, %v1490_v63, %v139_v11 }
 0x20b   :  { %v145_v13 = vmul.f32 %v143_v12, %v111_v45 }
 0x20d   :  { %v148_v14 = vmul.f32 %v1464_v2, %v145_v13  ;;  %v315_v2 = vld [vmem:[#allocation2 + $0x90] sm:$0xff] }
 0x20f   :  { %v1657_v15 = vadd.f32 %v1465_v6, %v148_v14  ;;  %v314_v14 = vld [vmem:[#allocation2 + $0x88] sm:$0xff] }
 0x211   :  { %1384 = vmatmul.msk.f32.gmra.mxu1 %vm94_vm3, %v1657_v15 }
 0x286   :  { %v183_v17 = vpop.f32.mrf.mxu1 }
 0x287   :  { %v184_v18 = vadd.f32 %v1466_v16, %v183_v17 }
 0x289   :  { %191 = vrot.lane.b32.xlu1 %v184_v18, %s1607_s0 }
 0x28e   :  { %v186_v19 = vpop.f32.mrf.mxu1 }
 0x28f   :  { %v187_v20 = vadd.f32 %v1466_v16, %v186_v19 }
 0x291   :  { %322 = vrot.lane.b32.xlu1 %v187_v20, %s1608_s22  ;;  %193 = vrot.lane.b32.xlu0 %v187_v20, %s1607_s0  ;;  %v1684_v33 = vpack.i.bf16 %v184_v18, %v187_v20 }
 0x299   :  { %320 = vrot.lane.b32.xlu1 %v184_v18, %s1608_s22 }
 0x2a1   :  { %316 = vrot.lane.b32.xlu1 %v184_v18, %s1609_s23 }
 0x2fb   :  { %v192_v22 = vpop.permute.xlu1 %191 }
 0x303   :  { %v194_v21 = vpop.permute.xlu0 %193  ;;  %v323_v38 = vpop.permute.xlu1 %322 }
 0x304   :  { %1385 = vmatpush.xpose.msk.msra.mxu2 %vm195_vm11, %v194_v21 }
 0x308   :  { %1386 = vmatpush.xpose.msk.msra.mxu2 %vm195_vm11, %v192_v22 }
 0x30b   :  { %1387 = vmatmul.msk.f32.vlgmr.msra.gmra.mxu2 %vm195_vm11, %v184_v18  ;;  %v321_v47 = vpop.permute.xlu1 %320 }
 0x313   :  { %1388 = vmatmul.msk.f32.gmra.mxu2 %vm195_vm11, %v187_v20  ;;  %v317_v12 = vpop.permute.xlu1 %316 }
 0x38e   :  { %v221_v23 = vpop.f32.mrf.mxu2 }
 0x38f   :  { %v227_v25 = vmul.f32 0.25, %v221_v23 }
 0x391   :  { %v229_v26 = vadd.f32 %v227_v25, %v1673_v24 }
 0x393   :  { %v231_v27 = vsel %vm195_vm11, %v229_v26, -inf }
 0x394   :  { %232 = vmax.xlane.f32.xlu2 %v231_v27 }
 0x396   :  { %v224_v28 = vpop.f32.mrf.mxu2 }
 0x397   :  { %v228_v30 = vmul.f32 0.25, %v224_v28 }
 0x399   :  { %v230_v31 = vadd.f32 %v228_v30, %v1680_v29 }
 0x39b   :  { %v234_v32 = vsel %vm195_vm11, %v230_v31, -inf }
 0x39c   :  { %235 = vmax.xlane.f32.xlu0 %v234_v32 }
 0x3ac   :  { %1445 = vrot.lane.b32.xlu2 %v1684_v33, %s1610_s28 }
 0x407   :  { %v233_v34 = vpop.xlane.xlu2 %232 }
 0x408   :  { %v237_v35 = vsub.f32 %v229_v26, %v233_v34 }
 0x40a   :  { %v239_v36 = vmul.f32 1.442695, %v237_v35 }
 0x40c   :  { %1491 = vpow2.f32 %v239_v36 }
 0x40f   :  { %v1446_v39 = vpop.permute.xlu2 %1445  ;;  %v236_v40 = vpop.xlane.xlu0 %235 }
 0x410   :  { %v238_v41 = vsub.f32 %v230_v31, %v236_v40  ;;  %v1447_v42 = vunpack.i.l.bf16 %v1446_v39  ;;  %v1448_v45 = vunpack.i.h.bf16 %v1446_v39 }
 0x412   :  { %v1492_v43 = vpop.eup %1491  ;;  %v241_v44 = vmul.f32 1.442695, %v238_v41  ;;  %305 = vmatpush.msra.mxu3 %v1447_v42 }
 0x413   :  { %v243_v46 = vsel %vm195_vm11, %v1492_v43, 0.0 }
 0x414   :  { %1493 = vpow2.f32 %v241_v44  ;;  %244 = vadd.xlane.f32.xlu2 %v243_v46  ;;  %306 = vmatpush.msra.mxu3 %v1448_v45  ;;  %v443_v44 = vld [vmem:[#allocation2 + $0xa0] sm:$0xff] }
 0x415   :  { %464 = vmatpush.msrb.mxu2 %v443_v44 }
 0x416   :  { %1391 = vmatpush.xpose.msk.msrb.mxu3 %vm195_vm11, %v323_v38 }
 0x41a   :  { %1392 = vmatpush.xpose.msk.msrb.mxu3 %vm195_vm11, %v321_v47  ;;  %v1494_v48 = vpop.eup %1493 }
 0x41b   :  { %v246_v49 = vsel %vm195_vm11, %v1494_v48, 0.0 }
 0x41c   :  { %247 = vadd.xlane.f32.xlu2 %v246_v49 }
 0x434   :  { %318 = vrot.lane.b32.xlu2 %v187_v20, %s1609_s23 }
 0x487   :  { %v245_v50 = vpop.xlane.xlu2 %244 }
 0x488   :  { %1495 = vrcp.f32 %v245_v50  ;;  %v260_v55 = vand.u32 2147483648, %v245_v50  ;;  %v258_v57 = vand.u32 2147483647, %v245_v50  ;;  %vm254_vm13 = vweird.f32 %v245_v50 }
 0x48a   :  { %v261_v60 = vor.u32 1.1754944e-38, %v260_v55  ;;  %vm259_vm15 = vcmp.eq.f32.partialorder %v258_v57, 8.507059e+37 }
 0x48e   :  { %v1496_v51 = vpop.eup %1495 }
 0x48f   :  { %v250_v52 = vmul.f32 %v1496_v51, %v245_v50  ;;  %v248_v53 = vpop.xlane.xlu2 %247  ;;  %vm255_vm12 = vweird.f32 %v1496_v51 }
 0x490   :  { %1497 = vrcp.f32 %v248_v53  ;;  %vm256_vm14 = vmor %vm254_vm13, %vm255_vm12  ;;  %v275_v3 = vand.u32 2147483648, %v248_v53  ;;  %v273_v5 = vand.u32 2147483647, %v248_v53  ;;  %vm269_vm1 = vweird.f32 %v248_v53 }
 0x491   :  { %v251_v54 = vsub.f32 1.0, %v250_v52 }
 0x492   :  { %v276_v7 = vor.u32 1.1754944e-38, %v275_v3  ;;  %vm274_vm4 = vcmp.eq.f32.partialorder %v273_v5, 8.507059e+37  ;;  %v442_v3 = vld [vmem:[#allocation2 + $0x98] sm:$0xff] }
 0x493   :  { %v252_v56 = vmul.f32 %v1496_v51, %v251_v54  ;;  %465 = vmatpush.msrb.mxu2 %v442_v3  ;;  %v617_v3 = vld [vmem:[#allocation2 + $0xe8] sm:$0xff] }
 0x495   :  { %v253_v58 = vadd.f32 %v1496_v51, %v252_v56 }
 0x496   :  { %v1498_v59 = vpop.eup %1497 }
 0x497   :  { %v265_v61 = vmul.f32 %v1498_v59, %v248_v53  ;;  %v257_v62 = vsel %vm256_vm14, %v1496_v51, %v253_v58  ;;  %vm270_vm0 = vweird.f32 %v1498_v59  ;;  %v319_v13 = vpop.permute.xlu2 %318 }
 0x498   :  { %v262_v63 = vsel %vm259_vm15, %v261_v60, %v257_v62  ;;  %vm271_vm2 = vmor %vm269_vm1, %vm270_vm0 }
 0x499   :  { %v266_v0 = vsub.f32 1.0, %v265_v61  ;;  %v263_v1 = vmul.f32 %v1492_v43, %v262_v63 }
 0x49b   :  { %v267_v4 = vmul.f32 %v1498_v59, %v266_v0  ;;  %1389 = vmatmul.msk.f32.vlgmr.msra.gmra.mxu3 %vm195_vm11, %v263_v1 }
 0x49c   :  { %493 = vmatpush.msra.mxu3 %v315_v2 }
 0x49d   :  { %v268_v6 = vadd.f32 %v1498_v59, %v267_v4 }
 0x49e   :  { %494 = vmatpush.msra.mxu3 %v314_v14 }
 0x49f   :  { %v272_v8 = vsel %vm271_vm2, %v1498_v59, %v268_v6 }
 0x4a0   :  { %v277_v9 = vsel %vm274_vm4, %v276_v7, %v272_v8  ;;  %v1467_v7 = vld [vmem:[#allocation2 + $0x22b] ss:$0 sm:$0xff] }
 0x4a1   :  { %v278_v11 = vmul.f32 %v1494_v48, %v277_v9 }
 0x4a3   :  { %1390 = vmatmul.msk.f32.gmra.mxu3 %vm195_vm11, %v278_v11 }
 0x4ab   :  { %1393 = vmatmul.msk.f32.vlgmr.msrb.gmra.mxu3 %vm195_vm11, %v317_v12 }
 0x4b3   :  { %1394 = vmatmul.msk.f32.gmra.mxu3 %vm195_vm11, %v319_v13 }
 0x51e   :  { %v308_v16 = vpop.f32.mrf.mxu3 }
 0x51f   :  { %1399 = vmatmul.msk.f32.vlgmr.msra.gmra.mxu3 %vm195_vm11, %v308_v16 }
 0x526   :  { %v311_v17 = vpop.f32.mrf.mxu3 }
 0x527   :  { %1400 = vmatmul.msk.f32.gmra.mxu3 %vm195_vm11, %v311_v17 }
 0x52e   :  { %v349_v18 = vpop.f32.mrf.mxu3 }
 0x52f   :  { %v355_v19 = vmul.f32 0.25, %v349_v18 }
 0x531   :  { %v357_v20 = vadd.f32 %v355_v19, %v1673_v24 }
 0x533   :  { %v359_v21 = vsel %vm195_vm11, %v357_v20, -inf }
 0x534   :  { %360 = vmax.xlane.f32.xlu1 %v359_v21 }
 0x536   :  { %v352_v22 = vpop.f32.mrf.mxu3 }
 0x537   :  { %v356_v23 = vmul.f32 0.25, %v352_v22 }
 0x539   :  { %v358_v25 = vadd.f32 %v356_v23, %v1680_v29 }
 0x53b   :  { %v362_v26 = vsel %vm195_vm11, %v358_v25, -inf }
 0x53c   :  { %363 = vmax.xlane.f32.xlu0 %v362_v26 }
 0x5a2   :  { %v496_v6 = vpop.f32.mrf.mxu3 }
 0x5a7   :  { %v361_v27 = vpop.xlane.xlu1 %360 }
 0x5a8   :  { %v365_v28 = vsub.f32 %v357_v20, %v361_v27 }
 0x5aa   :  { %v367_v30 = vmul.f32 1.442695, %v365_v28  ;;  %v499_v14 = vpop.f32.mrf.mxu3 }
 0x5ac   :  { %1499 = vpow2.f32 %v367_v30 }
 0x5af   :  { %v364_v31 = vpop.xlane.xlu0 %363 }
 0x5b0   :  { %v366_v32 = vsub.f32 %v358_v25, %v364_v31 }
 0x5b2   :  { %v1500_v34 = vpop.eup %1499  ;;  %v369_v35 = vmul.f32 1.442695, %v366_v32  ;;  %v562_v32 = vld [vmem:[#allocation2 + $0xb8] sm:$0xff] }
 0x5b3   :  { %v371_v36 = vsel %vm195_vm11, %v1500_v34, 0.0 }
 0x5b4   :  { %1501 = vpow2.f32 %v369_v35  ;;  %372 = vadd.xlane.f32.xlu2 %v371_v36  ;;  %v560_v35 = vld [vmem:[#allocation2 + $0xa8] sm:$0xff] }
 0x5ba   :  { %v1502_v38 = vpop.eup %1501 }
 0x5bb   :  { %v374_v39 = vsel %vm195_vm11, %v1502_v38, 0.0 }
 0x5bc   :  { %375 = vadd.xlane.f32.xlu0 %v374_v39 }
 0x5d0   :  { %1450 = vrot.lane.b32.xlu0 %v1684_v33, %s1611_s29 }
 0x627   :  { %v373_v40 = vpop.xlane.xlu2 %372 }
 0x628   :  { %1503 = vrcp.f32 %v373_v40  ;;  %v388_v51 = vand.u32 2147483648, %v373_v40  ;;  %vm382_vm6 = vweird.f32 %v373_v40  ;;  %v386_v52 = vand.u32 2147483647, %v373_v40 }
 0x62a   :  { %v389_v54 = vor.u32 1.1754944e-38, %v388_v51  ;;  %vm387_vm8 = vcmp.eq.f32.partialorder %v386_v52, 8.507059e+37  ;;  %v1468_v51 = vld [vmem:[#allocation2 + $0x22c] ss:$0 sm:$0xff] }
 0x62e   :  { %v1504_v41 = vpop.eup %1503 }
 0x62f   :  { %v376_v42 = vpop.xlane.xlu0 %375  ;;  %v378_v43 = vmul.f32 %v1504_v41, %v373_v40  ;;  %vm383_vm5 = vweird.f32 %v1504_v41 }
 0x630   :  { %1505 = vrcp.f32 %v376_v42  ;;  %vm384_vm7 = vmor %vm382_vm6, %vm383_vm5  ;;  %v403_v59 = vand.u32 2147483648, %v376_v42  ;;  %vm397_vm10 = vweird.f32 %v376_v42  ;;  %v401_v62 = vand.u32 2147483647, %v376_v42 }
 0x631   :  { %v379_v45 = vsub.f32 1.0, %v378_v43  ;;  %vm623_vm5 = vcmask 523264  }
 0x632   :  { %v404_v0 = vor.u32 1.1754944e-38, %v403_v59  ;;  %vm402_vm13 = vcmp.eq.f32.partialorder %v401_v62, 8.507059e+37 }
 0x633   :  { %v380_v47 = vmul.f32 %v1504_v41, %v379_v45 }
 0x635   :  { %v381_v49 = vadd.f32 %v1504_v41, %v380_v47 }
 0x636   :  { %v1506_v46 = vpop.eup %1505 }
 0x637   :  { %v393_v48 = vmul.f32 %v1506_v46, %v376_v42  ;;  %v385_v53 = vsel %vm384_vm7, %v1504_v41, %v381_v49  ;;  %vm398_vm9 = vweird.f32 %v1506_v46 }
 0x638   :  { %v390_v57 = vsel %vm387_vm8, %v389_v54, %v385_v53  ;;  %vm399_vm12 = vmor %vm397_vm10, %vm398_vm9  ;;  %v1469_v54 = vld [vmem:[#allocation2 + $0x22d] ss:$0 sm:$0xff] }
 0x639   :  { %v394_v50 = vsub.f32 1.0, %v393_v48  ;;  %v391_v61 = vmul.f32 %v1500_v34, %v390_v57  ;;  %v561_v34 = vld [vmem:[#allocation2 + $0xb0] sm:$0xff] }
 0x63b   :  { %v395_v33 = vmul.f32 %v1506_v46, %v394_v50 }
 0x63d   :  { %v396_v58 = vadd.f32 %v1506_v46, %v395_v33 }
 0x63f   :  { %v400_v63 = vsel %vm399_vm12, %v1506_v46, %v396_v58 }
 0x640   :  { %v405_v1 = vsel %vm402_vm13, %v404_v0, %v400_v63  ;;  %v620_v0 = vld [vmem:[#allocation2 + $0x100] sm:$0xff] }
 0x641   :  { %v406_v2 = vmul.f32 %v1502_v38, %v405_v1  ;;  %638 = vmatpush.msra.mxu2 %v620_v0  ;;  %v619_v1 = vld [vmem:[#allocation2 + $0xf8] sm:$0xff] }
 0x642   :  { %v1451_v55 = vpop.permute.xlu0 %1450 }
 0x643   :  { %v1452_v56 = vunpack.i.l.bf16 %v1451_v55  ;;  %v1453_v60 = vunpack.i.h.bf16 %v1451_v55  ;;  %639 = vmatpush.msra.mxu2 %v619_v1 }
 0x645   :  { %433 = vmatpush.msrb.mxu1 %v1452_v56 }
 0x647   :  { %434 = vmatpush.msrb.mxu1 %v1453_v60 }
 0x648   :  { %1395 = vmatmul.msk.f32.vlgmr.msrb.gmra.mxu1 %vm195_vm11, %v391_v61 }
 0x650   :  { %1396 = vmatmul.msk.f32.gmra.mxu1 %vm195_vm11, %v406_v2  ;;  %v618_v2 = vld [vmem:[#allocation2 + $0xf0] sm:$0xff] }
 0x651   :  { %640 = vmatpush.msra.mxu2 %v618_v2 }
 0x653   :  { %641 = vmatpush.msra.mxu2 %v617_v3 }
 0x6c5   :  { %v436_v4 = vpop.f32.mrf.mxu1 }
 0x6c6   :  { %1397 = vmatmul.msk.f32.vlgmr.msrb.gmra.mxu2 %vm195_vm11, %v436_v4  ;;  %v616_v4 = vld [vmem:[#allocation2 + $0xe0] sm:$0xff] }
 0x6c7   :  { %642 = vmatpush.msra.mxu2 %v616_v4 }
 0x6cd   :  { %v439_v5 = vpop.f32.mrf.mxu1 }
 0x6ce   :  { %1398 = vmatmul.msk.f32.gmra.mxu2 %vm195_vm11, %v439_v5  ;;  %v615_v5 = vld [vmem:[#allocation2 + $0xd8] sm:$0xff] }
 0x6cf   :  { %643 = vmatpush.msra.mxu2 %v615_v5 }
 0x749   :  { %v467_v8 = vpop.f32.mrf.mxu2 }
 0x74a   :  { %v497_v9 = vadd.f32 %v496_v6, %v467_v8  ;;  %v614_v6 = vld [vmem:[#allocation2 + $0xd0] sm:$0xff]  ;;  %v1470_v8 = vld [vmem:[#allocation2 + $0x22e] ss:$0 sm:$0xff] }
 0x74b   :  { %644 = vmatpush.msra.mxu2 %v614_v6 }
 0x74c   :  { %v504_v11 = vadd.f32 %v1467_v7, %v497_v9 }
 0x74e   :  { %v506_v12 = vadd.f32 %v504_v11, %v1653_v10 }
 0x750   :  { %v510_v13 = vsel %vm94_vm3, %v506_v12, 0.0 }
 0x751   :  { %511 = vadd.xlane.f32.xlu0 %v510_v13  ;;  %v470_v16 = vpop.f32.mrf.mxu2 }
 0x752   :  { %v500_v17 = vadd.f32 %v499_v14, %v470_v16 }
 0x754   :  { %v505_v18 = vadd.f32 %v1467_v7, %v500_v17  ;;  %v613_v7 = vld [vmem:[#allocation2 + $0xc8] sm:$0xff] }
 0x755   :  { %645 = vmatpush.msra.mxu2 %v613_v7  ;;  %v1472_v7 = vld [vmem:[#allocation2 + $0x230] ss:$0 sm:$0xff] }
 0x756   :  { %v507_v19 = vadd.f32 %v505_v18, %v1657_v15  ;;  %v563_v15 = vld [vmem:[#allocation2 + $0xc0] sm:$0xff] }
 0x757   :  { %584 = vmatpush.msra.mxu1 %v563_v15 }
 0x758   :  { %v513_v20 = vsel %vm94_vm3, %v507_v19, 0.0 }
 0x759   :  { %514 = vadd.xlane.f32.xlu1 %v513_v20  ;;  %585 = vmatpush.msra.mxu1 %v562_v32 }
 0x75b   :  { %586 = vmatpush.msra.mxu1 %v561_v34  ;;  %v1471_v34 = vld [vmem:[#allocation2 + $0x22f] ss:$0 sm:$0xff] }
 0x75d   :  { %587 = vmatpush.msra.mxu1 %v560_v35 }
 0x7c4   :  { %v512_v21 = vpop.xlane.xlu0 %511 }
 0x7c5   :  { %v516_v22 = vmul.f32 %v512_v21, %v1645_v37 }
 0x7c7   :  { %v518_v23 = vsub.f32 %v506_v12, %v516_v22 }
 0x7c9   :  { %v520_v25 = vmul.f32 %v518_v23, %v518_v23 }
 0x7cb   :  { %v522_v26 = vsel %vm94_vm3, %v520_v25, 0.0 }
 0x7cc   :  { %523 = vadd.xlane.f32.xlu2 %v522_v26  ;;  %v515_v10 = vpop.xlane.xlu1 %514 }
 0x7cd   :  { %v517_v27 = vmul.f32 %v515_v10, %v1645_v37 }
 0x7cf   :  { %v519_v28 = vsub.f32 %v507_v19, %v517_v27 }
 0x7d1   :  { %v521_v30 = vmul.f32 %v519_v28, %v519_v28 }
 0x7d3   :  { %v525_v31 = vsel %vm94_vm3, %v521_v30, 0.0 }
 0x7d4   :  { %526 = vadd.xlane.f32.xlu1 %v525_v31 }
 0x83f   :  { %v524_v36 = vpop.xlane.xlu2 %523 }
 0x840   :  { %v528_v38 = vmul.f32 %v524_v36, %v1645_v37 }
 0x842   :  { %v530_v39 = vadd.f32 1e-12, %v528_v38 }
 0x844   :  { %1507 = vrsqrt.f32 %v530_v39  ;;  %vm538_vm15 = vweird.f32 %v530_v39 }
 0x847   :  { %v527_v40 = vpop.xlane.xlu1 %526 }
 0x848   :  { %v529_v41 = vmul.f32 %v527_v40, %v1645_v37 }
 0x84a   :  { %v1508_v42 = vpop.eup %1507  ;;  %v531_v43 = vadd.f32 1e-12, %v529_v41 }
 0x84b   :  { %v533_v44 = vmul.f32 %v1508_v42, %v530_v39  ;;  %vm539_vm14 = vweird.f32 %v1508_v42 }
 0x84c   :  { %1509 = vrsqrt.f32 %v531_v43  ;;  %vm540_vm0 = vmor %vm538_vm15, %vm539_vm14  ;;  %vm548_vm2 = vweird.f32 %v531_v43 }
 0x84d   :  { %v534_v45 = vmul.f32 %v1508_v42, %v533_v44 }
 0x84f   :  { %v535_v46 = vmul.f32 0.5, %v534_v45 }
 0x851   :  { %v536_v47 = vsub.f32 1.5, %v535_v46 }
 0x852   :  { %v1510_v48 = vpop.eup %1509 }
 0x853   :  { %v537_v49 = vmul.f32 %v1508_v42, %v536_v47  ;;  %v543_v50 = vmul.f32 %v1510_v48, %v531_v43  ;;  %vm549_vm1 = vweird.f32 %v1510_v48 }
 0x854   :  { %vm550_vm4 = vmor %vm548_vm2, %vm549_vm1 }
 0x855   :  { %v541_v52 = vsel %vm540_vm0, %v1508_v42, %v537_v49  ;;  %v544_v33 = vmul.f32 %v1510_v48, %v543_v50 }
 0x856   :  { %v552_v53 = vmul.f32 %v541_v52, %v518_v23 }
 0x857   :  { %v545_v55 = vmul.f32 0.5, %v544_v33 }
 0x858   :  { %v555_v56 = vmul.f32 %v1468_v51, %v552_v53  ;;  %v710_v53 = vld [vmem:[#allocation2 + $0x120] sm:$0xff] }
 0x859   :  { %v546_v57 = vsub.f32 1.5, %v545_v55  ;;  %731 = vmatpush.msrb.mxu0 %v710_v53  ;;  %v708_v55 = vld [vmem:[#allocation2 + $0x110] sm:$0xff] }
 0x85a   :  { %v558_v58 = vadd.f32 %v1469_v54, %v555_v56  ;;  %v707_v56 = vld [vmem:[#allocation2 + $0x108] sm:$0xff] }
 0x85b   :  { %v547_v59 = vmul.f32 %v1510_v48, %v546_v57 }
 0x85c   :  { %1401 = vmatmul.msk.f32.vlgmr.msra.gmra.mxu1 %vm94_vm3, %v558_v58 }
 0x85d   :  { %v551_v60 = vsel %vm550_vm4, %v1510_v48, %v547_v59 }
 0x85e   :  { %v553_v61 = vmul.f32 %v551_v60, %v519_v28 }
 0x860   :  { %v556_v62 = vmul.f32 %v1468_v51, %v553_v61 }
 0x862   :  { %v559_v63 = vadd.f32 %v1469_v54, %v556_v62  ;;  %v709_v54 = vld [vmem:[#allocation2 + $0x118] sm:$0xff] }
 0x863   :  { %732 = vmatpush.msrb.mxu0 %v709_v54 }
 0x864   :  { %1402 = vmatmul.msk.f32.gmra.mxu1 %vm94_vm3, %v559_v63 }
 0x865   :  { %733 = vmatpush.msrb.mxu0 %v708_v55 }
 0x867   :  { %734 = vmatpush.msrb.mxu0 %v707_v56 }
 0x8d9   :  { %v589_v9 = vpop.f32.mrf.mxu1 }
 0x8da   :  { %v590_v11 = vadd.f32 %v1470_v8, %v589_v9 }
 0x8dc   :  { %v595_v12 = vmul.f32 %v590_v11, %v590_v11 }
 0x8de   :  { %v597_v13 = vmul.f32 %v595_v12, %v590_v11  ;;  %v1473_v12 = vld [vmem:[#allocation2 + $0x231] ss:$0 sm:$0xff] }
 0x8e0   :  { %v599_v14 = vmul.f32 0.044715, %v597_v13 }
 0x8e1   :  { %v592_v16 = vpop.f32.mrf.mxu1 }
 0x8e2   :  { %v601_v17 = vadd.f32 %v599_v14, %v590_v11  ;;  %v593_v18 = vadd.f32 %v1470_v8, %v592_v16 }
 0x8e4   :  { %v603_v19 = vmul.f32 0.7978846, %v601_v17  ;;  %v596_v20 = vmul.f32 %v593_v18, %v593_v18 }
 0x8e6   :  { %1511 = vtanh.f32 %v603_v19  ;;  %v598_v21 = vmul.f32 %v596_v20, %v593_v18 }
 0x8e8   :  { %v600_v22 = vmul.f32 0.044715, %v598_v21 }
 0x8ea   :  { %v602_v23 = vadd.f32 %v600_v22, %v593_v18 }
 0x8ec   :  { %v1512_v25 = vpop.eup %1511  ;;  %v604_v26 = vmul.f32 0.7978846, %v602_v23  ;;  %v1474_v23 = vld [vmem:[#allocation2 + $0x232] ss:$0 sm:$0xff] }
 0x8ed   :  { %v607_v10 = vadd.f32 1.0, %v1512_v25 }
 0x8ee   :  { %1513 = vtanh.f32 %v604_v26 }
 0x8ef   :  { %v609_v27 = vmul.f32 0.5, %v607_v10 }
 0x8f1   :  { %v611_v28 = vmul.f32 %v609_v27, %v590_v11 }
 0x8f3   :  { %1403 = vmatmul.msk.f32.vlgmr.msra.gmra.mxu2 %vm623_vm5, %v611_v28 }
 0x8f4   :  { %v1514_v30 = vpop.eup %1513 }
 0x8f5   :  { %v608_v31 = vadd.f32 1.0, %v1514_v30 }
 0x8f7   :  { %v610_v15 = vmul.f32 0.5, %v608_v31 }
 0x8f9   :  { %v612_v32 = vmul.f32 %v610_v15, %v593_v18 }
 0x8fb   :  { %1404 = vmatmul.msk.f32.gmra.mxu2 %vm623_vm5, %v612_v32 }
 0x976   :  { %v647_v35 = vpop.f32.mrf.mxu2 }
 0x977   :  { %v648_v36 = vadd.f32 %v1471_v34, %v647_v35 }
 0x979   :  { %v653_v38 = vadd.f32 %v648_v36, %v558_v58 }
 0x97b   :  { %v657_v39 = vsel %vm94_vm3, %v653_v38, 0.0 }
 0x97c   :  { %658 = vadd.xlane.f32.xlu2 %v657_v39 }
 0x97e   :  { %v650_v40 = vpop.f32.mrf.mxu2 }
 0x97f   :  { %v651_v41 = vadd.f32 %v1471_v34, %v650_v40 }
 0x981   :  { %v654_v42 = vadd.f32 %v651_v41, %v559_v63 }
 0x983   :  { %v660_v43 = vsel %vm94_vm3, %v654_v42, 0.0 }
 0x984   :  { %661 = vadd.xlane.f32.xlu1 %v660_v43 }
 0x9ef   :  { %v659_v44 = vpop.xlane.xlu2 %658 }
 0x9f0   :  { %v663_v45 = vmul.f32 %v659_v44, %v1645_v37 }
 0x9f2   :  { %v665_v46 = vsub.f32 %v653_v38, %v663_v45 }
 0x9f4   :  { %v667_v47 = vmul.f32 %v665_v46, %v665_v46 }
 0x9f6   :  { %v669_v48 = vsel %vm94_vm3, %v667_v47, 0.0 }
 0x9f7   :  { %670 = vadd.xlane.f32.xlu2 %v669_v48  ;;  %v662_v49 = vpop.xlane.xlu1 %661 }
 0x9f8   :  { %v664_v50 = vmul.f32 %v662_v49, %v1645_v37 }
 0x9fa   :  { %v666_v51 = vsub.f32 %v654_v42, %v664_v50 }
 0x9fc   :  { %v668_v52 = vmul.f32 %v666_v51, %v666_v51 }
 0x9fe   :  { %v672_v33 = vsel %vm94_vm3, %v668_v52, 0.0 }
 0x9ff   :  { %673 = vadd.xlane.f32.xlu1 %v672_v33 }
 0xa6a   :  { %v671_v57 = vpop.xlane.xlu2 %670 }
 0xa6b   :  { %v675_v58 = vmul.f32 %v671_v57, %v1645_v37 }
 0xa6d   :  { %v677_v59 = vadd.f32 1e-12, %v675_v58 }
 0xa6f   :  { %1515 = vrsqrt.f32 %v677_v59  ;;  %vm685_vm7 = vweird.f32 %v677_v59 }
 0xa72   :  { %v674_v60 = vpop.xlane.xlu1 %673 }
 0xa73   :  { %v676_v61 = vmul.f32 %v674_v60, %v1645_v37 }
 0xa75   :  { %v1516_v62 = vpop.eup %1515  ;;  %v678_v63 = vadd.f32 1e-12, %v676_v61 }
 0xa76   :  { %v680_v0 = vmul.f32 %v1516_v62, %v677_v59  ;;  %vm686_vm6 = vweird.f32 %v1516_v62 }
 0xa77   :  { %1517 = vrsqrt.f32 %v678_v63  ;;  %vm687_vm8 = vmor %vm685_vm7, %vm686_vm6  ;;  %vm695_vm10 = vweird.f32 %v678_v63 }
 0xa78   :  { %v681_v1 = vmul.f32 %v1516_v62, %v680_v0 }
 0xa7a   :  { %v682_v2 = vmul.f32 0.5, %v681_v1 }
 0xa7c   :  { %v683_v3 = vsub.f32 1.5, %v682_v2 }
 0xa7d   :  { %v1518_v4 = vpop.eup %1517 }
 0xa7e   :  { %v684_v5 = vmul.f32 %v1516_v62, %v683_v3  ;;  %v690_v6 = vmul.f32 %v1518_v4, %v678_v63  ;;  %vm696_vm9 = vweird.f32 %v1518_v4 }
 0xa7f   :  { %vm697_vm12 = vmor %vm695_vm10, %vm696_vm9 }
 0xa80   :  { %v688_v8 = vsel %vm687_vm8, %v1516_v62, %v684_v5  ;;  %v691_v9 = vmul.f32 %v1518_v4, %v690_v6 }
 0xa81   :  { %v699_v11 = vmul.f32 %v688_v8, %v665_v46 }
 0xa82   :  { %v692_v13 = vmul.f32 0.5, %v691_v9 }
 0xa83   :  { %v702_v14 = vmul.f32 %v1472_v7, %v699_v11 }
 0xa84   :  { %v693_v16 = vsub.f32 1.5, %v692_v13 }
 0xa85   :  { %v1733_v17 = vadd.f32 %v1473_v12, %v702_v14 }
 0xa86   :  { %v694_v18 = vmul.f32 %v1518_v4, %v693_v16  ;;  %v867_v16 = vld [vmem:[#allocation2 + $0x130] sm:$0xff] }
 0xa87   :  { %1405 = vmatmul.msk.f32.vlgmr.msrb.gmra.mxu0 %vm94_vm3, %v1733_v17 }
 0xa88   :  { %v698_v19 = vsel %vm697_vm12, %v1518_v4, %v694_v18 }
 0xa89   :  { %v700_v20 = vmul.f32 %v698_v19, %v666_v51 }
 0xa8b   :  { %v703_v21 = vmul.f32 %v1472_v7, %v700_v20 }
 0xa8d   :  { %v1737_v22 = vadd.f32 %v1473_v12, %v703_v21 }
 0xa8f   :  { %1406 = vmatmul.msk.f32.gmra.mxu0 %vm94_vm3, %v1737_v22 }
 0xb04   :  { %v736_v25 = vpop.f32.mrf.mxu0 }
 0xb05   :  { %v1741_v26 = vadd.f32 %v1474_v23, %v736_v25 }
 0xb07   :  { %872 = vrot.lane.b32.xlu1 %v1741_v26, %s1608_s22 }
 0xb0c   :  { %v739_v10 = vpop.f32.mrf.mxu0 }
 0xb0d   :  { %v1745_v27 = vadd.f32 %v1474_v23, %v739_v10 }
 0xb0f   :  { %870 = vrot.lane.b32.xlu1 %v1745_v27, %s1609_s23  ;;  %746 = vrot.lane.b32.xlu0 %v1745_v27, %s1607_s0  ;;  %v1459_v5 = vpack.i.bf16 %v1741_v26, %v1745_v27 }
 0xb10   :  { %874 = vrot.lane.b32.xlu2 %v1745_v27, %s1608_s22 }
 0xb17   :  { %744 = vrot.lane.b32.xlu0 %v1741_v26, %s1607_s0 }
 0xb18   :  { %868 = vrot.lane.b32.xlu2 %v1741_v26, %s1609_s23 }
 0xb6a   :  { %v875_v28 = vpop.permute.xlu2 %874 }
 0xb6b   :  { %1413 = vmatpush.xpose.msk.msrb.mxu2 %vm195_vm11, %v875_v28 }
 0xb72   :  { %v869_v31 = vpop.permute.xlu2 %868 }
 0xb79   :  { %v873_v30 = vpop.permute.xlu1 %872 }
 0xb7a   :  { %1414 = vmatpush.xpose.msk.msrb.mxu2 %vm195_vm11, %v873_v30 }
 0xb7d   :  { %1415 = vmatmul.msk.f32.vlgmr.msrb.gmra.mxu2 %vm195_vm11, %v869_v31 }
 0xb81   :  { %v747_v15 = vpop.permute.xlu0 %746  ;;  %v871_v32 = vpop.permute.xlu1 %870 }
 0xb82   :  { %1407 = vmatpush.xpose.msk.msrb.mxu3 %vm195_vm11, %v747_v15 }
 0xb85   :  { %1416 = vmatmul.msk.f32.gmra.mxu2 %vm195_vm11, %v871_v32 }
 0xb89   :  { %v745_v34 = vpop.permute.xlu0 %744 }
 0xb8a   :  { %1408 = vmatpush.xpose.msk.msrb.mxu3 %vm195_vm11, %v745_v34 }
 0xb8d   :  { %1409 = vmatmul.msk.f32.vlgmr.msrb.gmra.mxu3 %vm195_vm11, %v1741_v26 }
 0xb95   :  { %1410 = vmatmul.msk.f32.gmra.mxu3 %vm195_vm11, %v1745_v27 }
 0xc00   :  { %v901_v35 = vpop.f32.mrf.mxu2 }
 0xc01   :  { %v907_v36 = vmul.f32 0.25, %v901_v35 }
 0xc03   :  { %v909_v38 = vadd.f32 %v907_v36, %v1673_v24 }
 0xc05   :  { %v911_v39 = vsel %vm195_vm11, %v909_v38, -inf }
 0xc06   :  { %912 = vmax.xlane.f32.xlu2 %v911_v39 }
 0xc08   :  { %v904_v40 = vpop.f32.mrf.mxu2 }
 0xc09   :  { %v908_v41 = vmul.f32 0.25, %v904_v40 }
 0xc0b   :  { %v910_v42 = vadd.f32 %v908_v41, %v1680_v29 }
 0xc0d   :  { %v914_v43 = vsel %vm195_vm11, %v910_v42, -inf }
 0xc0e   :  { %915 = vmax.xlane.f32.xlu1 %v914_v43 }
 0xc10   :  { %v773_v44 = vpop.f32.mrf.mxu3 }
 0xc11   :  { %v779_v45 = vmul.f32 0.25, %v773_v44 }
 0xc13   :  { %v781_v46 = vadd.f32 %v779_v45, %v1673_v24 }
 0xc15   :  { %v783_v47 = vsel %vm195_vm11, %v781_v46, -inf }
 0xc16   :  { %784 = vmax.xlane.f32.xlu0 %v783_v47 }
 0xc18   :  { %v776_v48 = vpop.f32.mrf.mxu3 }
 0xc19   :  { %v780_v49 = vmul.f32 0.25, %v776_v48 }
 0xc1b   :  { %v782_v50 = vadd.f32 %v780_v49, %v1680_v29 }
 0xc1d   :  { %v786_v51 = vsel %vm195_vm11, %v782_v50, -inf }
 0xc1e   :  { %787 = vmax.xlane.f32.xlu2 %v786_v51 }
 0xc79   :  { %v913_v52 = vpop.xlane.xlu2 %912 }
 0xc7a   :  { %v917_v33 = vsub.f32 %v909_v38, %v913_v52 }
 0xc7c   :  { %v919_v53 = vmul.f32 1.442695, %v917_v33 }
 0xc7e   :  { %1519 = vpow2.f32 %v919_v53 }
 0xc81   :  { %v916_v54 = vpop.xlane.xlu1 %915 }
 0xc82   :  { %v918_v55 = vsub.f32 %v910_v42, %v916_v54 }
 0xc84   :  { %v1775_v56 = vpop.eup %1519  ;;  %v921_v57 = vmul.f32 1.442695, %v918_v55 }
 0xc85   :  { %v923_v24 = vsel %vm195_vm11, %v1775_v56, 0.0 }
 0xc86   :  { %1521 = vpow2.f32 %v921_v57  ;;  %924 = vadd.xlane.f32.xlu0 %v923_v24 }
 0xc89   :  { %v785_v58 = vpop.xlane.xlu0 %784 }
 0xc8a   :  { %v789_v59 = vsub.f32 %v781_v46, %v785_v58 }
 0xc8c   :  { %v1779_v29 = vpop.eup %1521  ;;  %v791_v60 = vmul.f32 1.442695, %v789_v59 }
 0xc8d   :  { %v926_v61 = vsel %vm195_vm11, %v1779_v29, 0.0 }
 0xc8e   :  { %1523 = vpow2.f32 %v791_v60  ;;  %927 = vadd.xlane.f32.xlu2 %v926_v61 }
 0xc91   :  { %v788_v62 = vpop.xlane.xlu2 %787 }
 0xc92   :  { %v790_v63 = vsub.f32 %v782_v50, %v788_v62 }
 0xc94   :  { %v1524_v0 = vpop.eup %1523  ;;  %v793_v1 = vmul.f32 1.442695, %v790_v63 }
 0xc95   :  { %v795_v2 = vsel %vm195_vm11, %v1524_v0, 0.0 }
 0xc96   :  { %1525 = vpow2.f32 %v793_v1  ;;  %796 = vadd.xlane.f32.xlu1 %v795_v2  ;;  %v866_v2 = vld [vmem:[#allocation2 + $0x128] sm:$0xff] }
 0xc9c   :  { %v1784_v3 = vpop.eup %1525 }
 0xc9d   :  { %v798_v4 = vsel %vm195_vm11, %v1784_v3, 0.0 }
 0xc9e   :  { %799 = vadd.xlane.f32.xlu0 %v798_v4  ;;  %v994_v4 = vld [vmem:[#allocation2 + $0x138] sm:$0xff] }
 0xca6   :  { %1460 = vrot.lane.b32.xlu2 %v1459_v5, %s1610_s28 }
 0xcaf   :  { %1455 = vrot.lane.b32.xlu1 %v1459_v5, %s1611_s29 }
 0xcf9   :  { %v925_v7 = vpop.xlane.xlu0 %924 }
 0xcfa   :  { %1527 = vrcp.f32 %v925_v7  ;;  %vm934_vm2 = vweird.f32 %v925_v7  ;;  %v940_v42 = vand.u32 2147483648, %v925_v7  ;;  %v938_v44 = vand.u32 2147483647, %v925_v7 }
 0xcfc   :  { %v941_v50 = vor.u32 1.1754944e-38, %v940_v42  ;;  %vm939_vm9 = vcmp.eq.f32.partialorder %v938_v44, 8.507059e+37 }
 0xd00   :  { %v1528_v12 = vpop.eup %1527 }
 0xd01   :  { %v1792_v6 = vpop.xlane.xlu2 %927  ;;  %v930_v14 = vmul.f32 %v1528_v12, %v925_v7  ;;  %vm935_vm1 = vweird.f32 %v1528_v12 }
 0xd02   :  { %vm936_vm6 = vmor %vm934_vm2, %vm935_vm1  ;;  %v955_v58 = vand.u32 2147483648, %v1792_v6  ;;  %v953_v61 = vand.u32 2147483647, %v1792_v6 }
 0xd03   :  { %v931_v21 = vsub.f32 1.0, %v930_v14 }
 0xd04   :  { %v956_v63 = vor.u32 1.1754944e-38, %v955_v58 }
 0xd05   :  { %v932_v28 = vmul.f32 %v1528_v12, %v931_v21 }
 0xd07   :  { %v933_v38 = vadd.f32 %v1528_v12, %v932_v28 }
 0xd09   :  { %v1461_v8 = vpop.permute.xlu2 %1460  ;;  %v797_v9 = vpop.xlane.xlu1 %796  ;;  %v937_v47 = vsel %vm936_vm6, %v1528_v12, %v933_v38 }
 0xd0a   :  { %v1462_v11 = vunpack.i.l.bf16 %v1461_v8  ;;  %1529 = vrcp.f32 %v797_v9  ;;  %v1463_v13 = vunpack.i.h.bf16 %v1461_v8  ;;  %v812_v26 = vand.u32 2147483648, %v797_v9  ;;  %v1475_v8 = vld [vmem:[#allocation2 + $0x233] ss:$0 sm:$0xff] }
 0xd0b   :  { %1531 = vrcp.f32 %v1792_v6  ;;  %v810_v27 = vand.u32 2147483647, %v797_v9  ;;  %vm806_vm14 = vweird.f32 %v797_v9  ;;  %v942_v53 = vsel %vm939_vm9, %v941_v50, %v937_v47 }
 0xd0c   :  { %857 = vmatpush.msrb.mxu1 %v1462_v11  ;;  %v813_v32 = vor.u32 1.1754944e-38, %v812_v26  ;;  %v943_v60 = vmul.f32 %v1775_v56, %v942_v53 }
 0xd0d   :  { %vm811_vm0 = vcmp.eq.f32.partialorder %v810_v27, 8.507059e+37 }
 0xd0e   :  { %858 = vmatpush.msrb.mxu1 %v1463_v13 }
 0xd10   :  { %v1530_v18 = vpop.eup %1529  ;;  %1045 = vmatpush.msra.mxu1 %v867_v16 }
 0xd11   :  { %v802_v19 = vmul.f32 %v1530_v18, %v797_v9  ;;  %v800_v20 = vpop.xlane.xlu0 %799  ;;  %v1532_v25 = vpop.eup %1531  ;;  %vm807_vm13 = vweird.f32 %v1530_v18 }
 0xd12   :  { %1533 = vrcp.f32 %v800_v20  ;;  %v945_v30 = vmul.f32 %v1532_v25, %v1792_v6  ;;  %vm808_vm15 = vmor %vm806_vm14, %vm807_vm13  ;;  %v827_v43 = vand.u32 2147483648, %v800_v20  ;;  %v825_v46 = vand.u32 2147483647, %v800_v20  ;;  %1046 = vmatpush.msra.mxu1 %v866_v2  ;;  %v1171_v2 = vld [vmem:[#allocation2 + $0x198] sm:$0xff] }
 0xd13   :  { %v803_v23 = vsub.f32 1.0, %v802_v19  ;;  %vm821_vm7 = vweird.f32 %v800_v20  ;;  %vm950_vm12 = vweird.f32 %v1532_v25  ;;  %vm949_vm13 = vweird.f32 %v1792_v6 }
 0xd14   :  { %v946_v39 = vsub.f32 1.0, %v945_v30  ;;  %v828_v51 = vor.u32 1.1754944e-38, %v827_v43  ;;  %vm826_vm10 = vcmp.eq.f32.partialorder %v825_v46, 8.507059e+37  ;;  %vm951_vm14 = vmor %vm949_vm13, %vm950_vm12  ;;  %vm1267_vm13 = vcmask 1041409  }
 0xd15   :  { %v804_v10 = vmul.f32 %v1530_v18, %v803_v23 }
 0xd16   :  { %v947_v48 = vmul.f32 %v1532_v25, %v946_v39 }
 0xd17   :  { %v805_v31 = vadd.f32 %v1530_v18, %v804_v10 }
 0xd18   :  { %v1534_v15 = vpop.eup %1533  ;;  %v948_v24 = vadd.f32 %v1532_v25, %v947_v48 }
 0xd19   :  { %v809_v34 = vsel %vm808_vm15, %v1530_v18, %v805_v31  ;;  %v817_v35 = vmul.f32 %v1534_v15, %v800_v20  ;;  %vm822_vm4 = vweird.f32 %v1534_v15  ;;  %vm954_vm15 = vcmp.eq.f32.partialorder %v953_v61, 8.507059e+37 }
 0xd1a   :  { %v814_v36 = vsel %vm811_vm0, %v813_v32, %v809_v34  ;;  %vm823_vm8 = vmor %vm821_vm7, %vm822_vm4  ;;  %v952_v62 = vsel %vm951_vm14, %v1532_v25, %v948_v24  ;;  %v1114_v34 = vld [vmem:[#allocation2 + $0x158] sm:$0xff]  ;;  %vm1306_vm14 = vcmask 392192  }
 0xd1b   :  { %v818_v40 = vsub.f32 1.0, %v817_v35  ;;  %v815_v41 = vmul.f32 %v1524_v0, %v814_v36  ;;  %v957_v0 = vsel %vm954_vm15, %v956_v63, %v952_v62  ;;  %v1113_v35 = vld [vmem:[#allocation2 + $0x150] sm:$0xff]  ;;  %v1112_v36 = vld [vmem:[#allocation2 + $0x148] sm:$0xff]  ;;  %vm1360_vm15 = vcmask 9216  }
 0xd1c   :  { %v958_v1 = vmul.f32 %v1779_v29, %v957_v0 }
 0xd1d   :  { %v819_v45 = vmul.f32 %v1534_v15, %v818_v40  ;;  %1411 = vmatmul.msk.f32.vlgmr.msrb.gmra.mxu1 %vm195_vm11, %v815_v41 }
 0xd1f   :  { %v820_v49 = vadd.f32 %v1534_v15, %v819_v45 }
 0xd21   :  { %v1456_v52 = vpop.permute.xlu1 %1455  ;;  %v824_v33 = vsel %vm823_vm8, %v1534_v15, %v820_v49 }
 0xd22   :  { %v1457_v54 = vunpack.i.l.bf16 %v1456_v52  ;;  %v829_v55 = vsel %vm826_vm10, %v828_v51, %v824_v33  ;;  %v1458_v59 = vunpack.i.h.bf16 %v1456_v52  ;;  %v1476_v52 = vld [vmem:[#allocation2 + $0x234] ss:$0 sm:$0xff] }
 0xd23   :  { %v830_v57 = vmul.f32 %v1784_v3, %v829_v55  ;;  %v995_v3 = vld [vmem:[#allocation2 + $0x140] sm:$0xff]  ;;  %v1477_v55 = vld [vmem:[#allocation2 + $0x235] ss:$0 sm:$0xff] }
 0xd24   :  { %985 = vmatpush.msra.mxu0 %v1457_v54  ;;  %1016 = vmatpush.msra.mxu3 %v995_v3  ;;  %v1170_v3 = vld [vmem:[#allocation2 + $0x190] sm:$0xff] }
 0xd25   :  { %1412 = vmatmul.msk.f32.gmra.mxu1 %vm195_vm11, %v830_v57 }
 0xd26   :  { %986 = vmatpush.msra.mxu0 %v1458_v59  ;;  %1017 = vmatpush.msra.mxu3 %v994_v4  ;;  %v1169_v4 = vld [vmem:[#allocation2 + $0x188] sm:$0xff] }
 0xd27   :  { %1417 = vmatmul.msk.f32.vlgmr.msra.gmra.mxu0 %vm195_vm11, %v943_v60 }
 0xd2f   :  { %1418 = vmatmul.msk.f32.gmra.mxu0 %vm195_vm11, %v958_v1  ;;  %v1172_v1 = vld [vmem:[#allocation2 + $0x1a0] sm:$0xff] }
 0xd30   :  { %1189 = vmatpush.msrb.mxu0 %v1172_v1 }
 0xd32   :  { %1190 = vmatpush.msrb.mxu0 %v1171_v2 }
 0xd34   :  { %1191 = vmatpush.msrb.mxu0 %v1170_v3 }
 0xd36   :  { %1192 = vmatpush.msrb.mxu0 %v1169_v4 }
 0xd9a   :  { %v860_v56 = vpop.f32.mrf.mxu1 }
 0xd9b   :  { %1421 = vmatmul.msk.f32.vlgmr.msra.gmra.mxu1 %vm195_vm11, %v860_v56  ;;  %v1168_v56 = vld [vmem:[#allocation2 + $0x180] sm:$0xff] }
 0xd9c   :  { %1193 = vmatpush.msrb.mxu0 %v1168_v56 }
 0xda2   :  { %v863_v5 = vpop.f32.mrf.mxu1 }
 0xda3   :  { %1422 = vmatmul.msk.f32.gmra.mxu1 %vm195_vm11, %v863_v5  ;;  %v1167_v5 = vld [vmem:[#allocation2 + $0x178] sm:$0xff] }
 0xda4   :  { %v988_v6 = vpop.f32.mrf.mxu0  ;;  %1194 = vmatpush.msrb.mxu0 %v1167_v5 }
 0xda5   :  { %1419 = vmatmul.msk.f32.vlgmr.msra.gmra.mxu3 %vm195_vm11, %v988_v6  ;;  %v1166_v6 = vld [vmem:[#allocation2 + $0x170] sm:$0xff] }
 0xda6   :  { %1195 = vmatpush.msrb.mxu0 %v1166_v6 }
 0xdac   :  { %v991_v7 = vpop.f32.mrf.mxu0 }
 0xdad   :  { %1420 = vmatmul.msk.f32.gmra.mxu3 %vm195_vm11, %v991_v7  ;;  %v1165_v7 = vld [vmem:[#allocation2 + $0x168] sm:$0xff] }
 0xdae   :  { %1196 = vmatpush.msrb.mxu0 %v1165_v7 }
 0xe18   :  { %v1048_v29 = vpop.f32.mrf.mxu1 }
 0xe20   :  { %v1051_v16 = vpop.f32.mrf.mxu1 }
 0xe28   :  { %v1019_v9 = vpop.f32.mrf.mxu3 }
 0xe29   :  { %v1049_v11 = vadd.f32 %v1048_v29, %v1019_v9  ;;  %v1478_v29 = vld [vmem:[#allocation2 + $0x236] ss:$0 sm:$0xff] }
 0xe2b   :  { %v1056_v12 = vadd.f32 %v1475_v8, %v1049_v11 }
 0xe2d   :  { %v1058_v13 = vadd.f32 %v1056_v12, %v1733_v17 }
 0xe2f   :  { %v1062_v14 = vsel %vm94_vm3, %v1058_v13, 0.0 }
 0xe30   :  { %1063 = vadd.xlane.f32.xlu0 %v1062_v14  ;;  %v1022_v18 = vpop.f32.mrf.mxu3 }
 0xe31   :  { %v1052_v19 = vadd.f32 %v1051_v16, %v1022_v18 }
 0xe33   :  { %v1057_v20 = vadd.f32 %v1475_v8, %v1052_v19 }
 0xe35   :  { %v1059_v21 = vadd.f32 %v1057_v20, %v1737_v22  ;;  %v1115_v22 = vld [vmem:[#allocation2 + $0x160] sm:$0xff] }
 0xe36   :  { %1136 = vmatpush.msra.mxu2 %v1115_v22  ;;  %v1479_v22 = vld [vmem:[#allocation2 + $0x237] ss:$0 sm:$0xff] }
 0xe37   :  { %v1065_v23 = vsel %vm94_vm3, %v1059_v21, 0.0 }
 0xe38   :  { %1066 = vadd.xlane.f32.xlu0 %v1065_v23  ;;  %1137 = vmatpush.msra.mxu2 %v1114_v34 }
 0xe3a   :  { %1138 = vmatpush.msra.mxu2 %v1113_v35 }
 0xe3c   :  { %1139 = vmatpush.msra.mxu2 %v1112_v36 }
 0xea3   :  { %v1064_v25 = vpop.xlane.xlu0 %1063 }
 0xea4   :  { %v1068_v26 = vmul.f32 %v1064_v25, %v1645_v37 }
 0xea6   :  { %v1070_v10 = vsub.f32 %v1058_v13, %v1068_v26 }
 0xea8   :  { %v1072_v27 = vmul.f32 %v1070_v10, %v1070_v10 }
 0xeaa   :  { %v1074_v28 = vsel %vm94_vm3, %v1072_v27, 0.0 }
 0xeab   :  { %1075 = vadd.xlane.f32.xlu0 %v1074_v28  ;;  %v1067_v17 = vpop.xlane.xlu0 %1066 }
 0xeac   :  { %v1069_v30 = vmul.f32 %v1067_v17, %v1645_v37 }
 0xeae   :  { %v1071_v31 = vsub.f32 %v1059_v21, %v1069_v30 }
 0xeb0   :  { %v1073_v15 = vmul.f32 %v1071_v31, %v1071_v31 }
 0xeb2   :  { %v1077_v32 = vsel %vm94_vm3, %v1073_v15, 0.0 }
 0xeb3   :  { %1078 = vadd.xlane.f32.xlu1 %v1077_v32 }
 0xf1e   :  { %v1076_v38 = vpop.xlane.xlu0 %1075 }
 0xf1f   :  { %v1080_v39 = vmul.f32 %v1076_v38, %v1645_v37 }
 0xf21   :  { %v1082_v40 = vadd.f32 1e-12, %v1080_v39 }
 0xf23   :  { %1535 = vrsqrt.f32 %v1082_v40  ;;  %vm1090_vm0 = vweird.f32 %v1082_v40 }
 0xf26   :  { %v1079_v41 = vpop.xlane.xlu1 %1078 }
 0xf27   :  { %v1081_v42 = vmul.f32 %v1079_v41, %v1645_v37 }
 0xf29   :  { %v1536_v43 = vpop.eup %1535  ;;  %v1083_v44 = vadd.f32 1e-12, %v1081_v42 }
 0xf2a   :  { %v1085_v45 = vmul.f32 %v1536_v43, %v1082_v40  ;;  %vm1091_vm11 = vweird.f32 %v1536_v43 }
 0xf2b   :  { %1537 = vrsqrt.f32 %v1083_v44  ;;  %vm1092_vm1 = vmor %vm1090_vm0, %vm1091_vm11  ;;  %vm1100_vm4 = vweird.f32 %v1083_v44 }
 0xf2c   :  { %v1086_v46 = vmul.f32 %v1536_v43, %v1085_v45 }
 0xf2e   :  { %v1087_v47 = vmul.f32 0.5, %v1086_v46 }
 0xf30   :  { %v1088_v48 = vsub.f32 1.5, %v1087_v47 }
 0xf31   :  { %v1538_v49 = vpop.eup %1537 }
 0xf32   :  { %v1089_v50 = vmul.f32 %v1536_v43, %v1088_v48  ;;  %v1095_v51 = vmul.f32 %v1538_v49, %v1083_v44  ;;  %vm1101_vm2 = vweird.f32 %v1538_v49 }
 0xf33   :  { %vm1102_vm6 = vmor %vm1100_vm4, %vm1101_vm2 }
 0xf34   :  { %v1093_v33 = vsel %vm1092_vm1, %v1536_v43, %v1089_v50  ;;  %v1096_v53 = vmul.f32 %v1538_v49, %v1095_v51 }
 0xf35   :  { %v1104_v54 = vmul.f32 %v1093_v33, %v1070_v10  ;;  %v1261_v33 = vld [vmem:[#allocation2 + $0x1c0] sm:$0xff] }
 0xf36   :  { %v1097_v57 = vmul.f32 0.5, %v1096_v53  ;;  %1283 = vmatpush.msrb.mxu3 %v1261_v33 }
 0xf37   :  { %v1107_v24 = vmul.f32 %v1476_v52, %v1104_v54 }
 0xf38   :  { %v1098_v58 = vsub.f32 1.5, %v1097_v57  ;;  %v1259_v57 = vld [vmem:[#allocation2 + $0x1b0] sm:$0xff] }
 0xf39   :  { %v1110_v59 = vadd.f32 %v1477_v55, %v1107_v24 }
 0xf3a   :  { %v1099_v60 = vmul.f32 %v1538_v49, %v1098_v58  ;;  %v1258_v58 = vld [vmem:[#allocation2 + $0x1a8] sm:$0xff] }
 0xf3b   :  { %1423 = vmatmul.msk.f32.vlgmr.msra.gmra.mxu2 %vm94_vm3, %v1110_v59 }
 0xf3c   :  { %v1103_v61 = vsel %vm1102_vm6, %v1538_v49, %v1099_v60 }
 0xf3d   :  { %v1105_v62 = vmul.f32 %v1103_v61, %v1071_v31 }
 0xf3f   :  { %v1108_v63 = vmul.f32 %v1476_v52, %v1105_v62 }
 0xf41   :  { %v1111_v0 = vadd.f32 %v1477_v55, %v1108_v63  ;;  %v1260_v55 = vld [vmem:[#allocation2 + $0x1b8] sm:$0xff] }
 0xf42   :  { %1284 = vmatpush.msrb.mxu3 %v1260_v55 }
 0xf43   :  { %1424 = vmatmul.msk.f32.gmra.mxu2 %vm94_vm3, %v1111_v0 }
 0xf44   :  { %1285 = vmatpush.msrb.mxu3 %v1259_v57 }
 0xf46   :  { %1286 = vmatpush.msrb.mxu3 %v1258_v58 }
 0xfbe   :  { %v1141_v8 = vpop.f32.mrf.mxu2 }
 0xfbf   :  { %v1142_v9 = vadd.f32 %v1478_v29, %v1141_v8 }
 0xfc1   :  { %v1147_v11 = vmul.f32 %v1142_v9, %v1142_v9 }
 0xfc3   :  { %v1149_v12 = vmul.f32 %v1147_v11, %v1142_v9 }
 0xfc5   :  { %v1151_v13 = vmul.f32 0.044715, %v1149_v12  ;;  %v1481_v12 = vld [vmem:[#allocation2 + $0x239] ss:$0 sm:$0xff] }
 0xfc6   :  { %v1144_v14 = vpop.f32.mrf.mxu2 }
 0xfc7   :  { %v1153_v16 = vadd.f32 %v1151_v13, %v1142_v9  ;;  %v1145_v18 = vadd.f32 %v1478_v29, %v1144_v14  ;;  %v1480_v29 = vld [vmem:[#allocation2 + $0x238] ss:$0 sm:$0xff] }
 0xfc9   :  { %v1155_v19 = vmul.f32 0.7978846, %v1153_v16  ;;  %v1148_v20 = vmul.f32 %v1145_v18, %v1145_v18 }
 0xfcb   :  { %1539 = vtanh.f32 %v1155_v19  ;;  %v1150_v21 = vmul.f32 %v1148_v20, %v1145_v18 }
 0xfcd   :  { %v1152_v23 = vmul.f32 0.044715, %v1150_v21 }
 0xfcf   :  { %v1154_v25 = vadd.f32 %v1152_v23, %v1145_v18 }
 0xfd1   :  { %v1540_v26 = vpop.eup %1539  ;;  %v1156_v10 = vmul.f32 0.7978846, %v1154_v25  ;;  %v1303_v25 = vld [vmem:[#allocation2 + $0x1f0] sm:$0xff] }
 0xfd2   :  { %v1159_v27 = vadd.f32 1.0, %v1540_v26  ;;  %1320 = vmatpush.msrb.mxu1 %v1303_v25  ;;  %v1302_v26 = vld [vmem:[#allocation2 + $0x1e8] sm:$0xff] }
 0xfd3   :  { %1541 = vtanh.f32 %v1156_v10  ;;  %v1301_v10 = vld [vmem:[#allocation2 + $0x1e0] sm:$0xff] }
 0xfd4   :  { %v1161_v28 = vmul.f32 0.5, %v1159_v27  ;;  %1321 = vmatpush.msrb.mxu1 %v1302_v26  ;;  %v1300_v27 = vld [vmem:[#allocation2 + $0x1d8] sm:$0xff] }
 0xfd6   :  { %v1163_v17 = vmul.f32 %v1161_v28, %v1142_v9  ;;  %1322 = vmatpush.msrb.mxu1 %v1301_v10  ;;  %v1299_v28 = vld [vmem:[#allocation2 + $0x1d0] sm:$0xff] }
 0xfd8   :  { %1425 = vmatmul.msk.f32.vlgmr.msrb.gmra.mxu0 %vm623_vm5, %v1163_v17  ;;  %1323 = vmatpush.msrb.mxu1 %v1300_v27  ;;  %v1298_v17 = vld [vmem:[#allocation2 + $0x1c8] sm:$0xff] }
 0xfd9   :  { %v1542_v30 = vpop.eup %1541 }
 0xfda   :  { %v1160_v31 = vadd.f32 1.0, %v1542_v30  ;;  %1324 = vmatpush.msrb.mxu1 %v1299_v28  ;;  %v1334_v30 = vld [vmem:[#allocation2 + $0x210] sm:$0xff] }
 0xfdb   :  { %1352 = vmatpush.msrb.mxu2 %v1334_v30 }
 0xfdc   :  { %v1162_v15 = vmul.f32 0.5, %v1160_v31  ;;  %1325 = vmatpush.msrb.mxu1 %v1298_v17  ;;  %v1482_v31 = vld [vmem:[#allocation2 + $0x23a] ss:$0 sm:$0xff] }
 0xfde   :  { %v1164_v32 = vmul.f32 %v1162_v15, %v1145_v18 }
 0xfe0   :  { %1426 = vmatmul.msk.f32.gmra.mxu0 %vm623_vm5, %v1164_v32 }
0x1055   :  { %v1198_v34 = vpop.f32.mrf.mxu0 }
0x1056   :  { %v1199_v35 = vadd.f32 %v1479_v22, %v1198_v34 }
0x1058   :  { %v1204_v36 = vadd.f32 %v1199_v35, %v1110_v59  ;;  %v1292_v59 = vld [vmem:[%s1842_s1 + $0x10] sm:$0x3]  ;;  %s1613_s1 = smov [#allocation5]  }
0x1059   :  { %s1367_s6 = sshll.u32 %s1613_s1, 4  ;;  %s1368_s6 = int_to_ptr.vmem [resolvable:$true] %s1367_s6 }
0x105a   :  { %v1208_v38 = vsel %vm94_vm3, %v1204_v36, 0.0 }
0x105b   :  { %1209 = vadd.xlane.f32.xlu0 %v1208_v38  ;;  %v1332_v38 = vld [vmem:[#allocation2 + $0x200] sm:$0xff] }
0x105d   :  { %v1201_v39 = vpop.f32.mrf.mxu0 }
0x105e   :  { %v1202_v40 = vadd.f32 %v1479_v22, %v1201_v39  ;;  %v1331_v39 = vld [vmem:[#allocation2 + $0x1f8] sm:$0xff] }
0x1060   :  { %v1205_v41 = vadd.f32 %v1202_v40, %v1111_v0  ;;  %v1483_v40 = vld [vmem:[#allocation2 + $0x23b] ss:$0 sm:$0xff] }
0x1062   :  { %v1211_v42 = vsel %vm94_vm3, %v1205_v41, 0.0 }
0x1063   :  { %1212 = vadd.xlane.f32.xlu2 %v1211_v42 }
0x10ce   :  { %v1210_v43 = vpop.xlane.xlu0 %1209 }
0x10cf   :  { %v1214_v46 = vmul.f32 %v1210_v43, %v1645_v37 }
0x10d1   :  { %v1216_v49 = vsub.f32 %v1204_v36, %v1214_v46  ;;  %v1333_v36 = vld [vmem:[#allocation2 + $0x208] sm:$0xff] }
0x10d2   :  { %1353 = vmatpush.msrb.mxu2 %v1333_v36 }
0x10d3   :  { %v1218_v51 = vmul.f32 %v1216_v49, %v1216_v49 }
0x10d4   :  { %1354 = vmatpush.msrb.mxu2 %v1332_v38 }
0x10d5   :  { %v1220_v52 = vsel %vm94_vm3, %v1218_v51, 0.0 }
0x10d6   :  { %v1213_v44 = vpop.xlane.xlu2 %1212  ;;  %1355 = vmatpush.msrb.mxu2 %v1331_v39 }
0x10d7   :  { %v1215_v45 = vmul.f32 %v1213_v44, %v1645_v37  ;;  %v1484_v44 = vld [vmem:[#allocation2 + $0x23c] ss:$0 sm:$0xff] }
0x10d9   :  { %v1217_v47 = vsub.f32 %v1205_v41, %v1215_v45 }
0x10db   :  { %v1219_v48 = vmul.f32 %v1217_v47, %v1217_v47 }
0x10dd   :  { %v1223_v50 = vsel %vm94_vm3, %v1219_v48, 0.0 }
0x10de   :  { %1224 = vadd.xlane.f32.xlu0 %v1223_v50 }
0x10e6   :  { %1221 = vadd.xlane.f32.xlu0 %v1220_v52 }
0x10fa   :  { %1294 = vrot.lane.b32.xlu0 %v1292_v59, %s1612_s5 }
0x1151   :  { %v1225_v53 = vpop.xlane.xlu0 %1224 }
0x1152   :  { %v1227_v54 = vmul.f32 %v1225_v53, %v1645_v37 }
0x1154   :  { %v1229_v24 = vadd.f32 1e-12, %v1227_v54 }
0x1156   :  { %1543 = vrsqrt.f32 %v1229_v24  ;;  %vm1246_vm7 = vweird.f32 %v1229_v24 }
0x1159   :  { %v1222_v60 = vpop.xlane.xlu0 %1221 }
0x115a   :  { %v1226_v61 = vmul.f32 %v1222_v60, %v1645_v37 }
0x115c   :  { %v1544_v62 = vpop.eup %1543  ;;  %v1228_v63 = vadd.f32 1e-12, %v1226_v61 }
0x115d   :  { %v1241_v0 = vmul.f32 %v1544_v62, %v1229_v24  ;;  %vm1247_vm5 = vweird.f32 %v1544_v62 }
0x115e   :  { %1545 = vrsqrt.f32 %v1228_v63  ;;  %vm1248_vm8 = vmor %vm1246_vm7, %vm1247_vm5  ;;  %vm1236_vm10 = vweird.f32 %v1228_v63 }
0x115f   :  { %v1242_v1 = vmul.f32 %v1544_v62, %v1241_v0 }
0x1161   :  { %v1243_v2 = vmul.f32 0.5, %v1242_v1 }
0x1163   :  { %v1244_v3 = vsub.f32 1.5, %v1243_v2 }
0x1164   :  { %v1546_v4 = vpop.eup %1545 }
0x1165   :  { %v1245_v56 = vmul.f32 %v1544_v62, %v1244_v3  ;;  %v1231_v5 = vmul.f32 %v1546_v4, %v1228_v63  ;;  %vm1237_vm9 = vweird.f32 %v1546_v4 }
0x1166   :  { %vm1238_vm12 = vmor %vm1236_vm10, %vm1237_vm9 }
0x1167   :  { %v1249_v6 = vsel %vm1248_vm8, %v1544_v62, %v1245_v56  ;;  %v1232_v7 = vmul.f32 %v1546_v4, %v1231_v5 }
0x1168   :  { %v1251_v8 = vmul.f32 %v1249_v6, %v1217_v47 }
0x1169   :  { %v1233_v9 = vmul.f32 0.5, %v1232_v7 }
0x116a   :  { %v1254_v37 = vmul.f32 %v1480_v29, %v1251_v8 }
0x116b   :  { %v1234_v11 = vsub.f32 1.5, %v1233_v9 }
0x116c   :  { %v1257_v18 = vadd.f32 %v1481_v12, %v1254_v37  ;;  %v1295_v22 = vpop.permute.xlu0 %1294 }
0x116d   :  { %v1235_v13 = vmul.f32 %v1546_v4, %v1234_v11 }
0x116e   :  { %v1266_v21 = vrot.slane %v1257_v18, 7 }
0x116f   :  { %v1239_v14 = vsel %vm1238_vm12, %v1546_v4, %v1235_v13 }
0x1170   :  { %v1250_v16 = vmul.f32 %v1239_v14, %v1216_v49 }
0x1172   :  { %v1253_v19 = vmul.f32 %v1480_v29, %v1250_v16 }
0x1174   :  { %v1256_v20 = vadd.f32 %v1481_v12, %v1253_v19 }
0x1176   :  { %v1268_v23 = vsel %vm1267_vm13, %v1266_v21, %v1256_v20 }
0x1177   :  { %1427 = vmatmul.msk.f32.vlgmr.msrb.gmra.mxu3 %vm94_vm3, %v1268_v23 }
0x11fa   :  { %v1288_v15 = vpop.f32.mrf.mxu3 }
0x11fb   :  { %v1289_v32 = vadd.f32 %v1482_v31, %v1288_v15 }
0x11fd   :  { %1547 = vtanh.f32 %v1289_v32 }
0x1203   :  { %v1548_v34 = vpop.eup %1547 }
0x1204   :  { %v1297_v35 = vsel %vm94_vm3, %v1548_v34, %v1295_v22 }
0x1205   :  { %1428 = vmatmul.msk.f32.vlgmr.msrb.gmra.mxu1 %vm1306_vm14, %v1297_v35 }
0x1282   :  { %v1327_v41 = vpop.f32.mrf.mxu1 }
0x1283   :  { %v1328_v42 = vadd.f32 %v1483_v40, %v1327_v41 }
0x1285   :  { %v1330_v43 = vmax.f32 %v1328_v42, 0.0 }
0x1287   :  { %1429 = vmatmul.msk.f32.vlgmr.msrb.gmra.mxu2 %vm94_vm3, %v1330_v43 }
0x130a   :  { %v1357_v45 = vpop.f32.mrf.mxu2 }
0x130b   :  { %v1358_v46 = vadd.f32 %v1484_v44, %v1357_v45 }
0x130d   :  { %1361 = vst.msk [vmem:[#allocation5] sm:$0x3] %vm1360_vm15, %v1358_v46 }
0x130e   :  { %1372 = dma.vmem_to_hbm [thread:$0]  %s1368_s6, 32, %s1370_s9, [#allocation4]  }
0x130f   :  { %1599 = dma.done.wait [#allocation4], 32  }
0x1310   :  { %1600 = vsyncadd [#allocation4], 4294967264 }
0x1311   :  { %1377 = vsyncpa [#allocation3], 1 }
0x1312   :  { %1378 = vsyncpa [#allocation4], 1 }

</bundles_post_ra>
